<compile_context>
chip_gen: v5e
topology: v5e:2x2
jax: 0.10.0
libtpu: 0.0.40
codegen_flags: <defaults>
</compile_context>

<pallas_src>
import functools
import numpy as np
import jax
import jax.numpy as jnp
from jax.experimental import pallas as pl
from jax.experimental.pallas import tpu as pltpu


# ----------------------------- in-kernel helpers -----------------------------

def _layernorm(x, gamma, beta, eps=1e-6):
    mean = jnp.mean(x, axis=-1, keepdims=True)
    var = jnp.mean((x - mean) ** 2, axis=-1, keepdims=True)
    return (x - mean) * jax.lax.rsqrt(var + eps) * gamma + beta


# ----------------------------- fused Pallas kernel ----------------------------

def fused_encoder_kernel(n_head, d_k, d_v,
                         x_ref, pos_ref, mask_ref, og_ref, ob_ref,
                         wqkv_ref, wfc_ref, ln1g_ref, ln1b_ref,
                         w1_ref, b1_ref, w2_ref, b2_ref, ln2g_ref, ln2b_ref,
                         o_ref,
                         x_scr, bias_scr, q_scr, k_scr, v_scr, ctx_scr):
    l = pl.program_id(1)
    n_l = pl.num_programs(1)
    hdk = n_head * d_k

    # ---- prep (pos-enc + outer LayerNorm + mask->bias), only on first layer step ----
    @pl.when(l == 0)
    def _():
        x_scr[...] = _layernorm(x_ref[0] + pos_ref[0], og_ref[...], ob_ref[...])
        bias_scr[...] = jnp.where(mask_ref[0] == 0.0,
                                  jnp.float32(-1e9), jnp.float32(0.0))    # (1, L)

    x = x_scr[...]                                   # (L, D) f32 running activation
    xb = x.astype(jnp.bfloat16)

    # ---- fused QKV projection: one wide MXU matmul ----
    qkv = jnp.dot(xb, wqkv_ref[0], preferred_element_type=jnp.float32)   # (L, 2*hdk+hdv)

    # stage heads into head-major (H, L, d) bf16 scratch (static lane slices + stores;
    # avoids in-kernel cross-lane reshapes).  q is pre-scaled by 1/sqrt(d_k).
    inv_temp = 1.0 / (d_k ** 0.5)
    for h in range(n_head):
        q_scr[h] = (qkv[:, h * d_k:(h + 1) * d_k] * inv_temp).astype(jnp.bfloat16)
        k_scr[h] = qkv[:, hdk + h * d_k: hdk + (h + 1) * d_k].astype(jnp.bfloat16)
        v_scr[h] = qkv[:, 2 * hdk + h * d_v: 2 * hdk + (h + 1) * d_v].astype(jnp.bfloat16)

    # ---- batched multi-head attention ----
    s = jnp.einsum('hqd,hkd->hqk', q_scr[...], k_scr[...],
                   preferred_element_type=jnp.float32)                   # (H, L, L)
    s = s + bias_scr[...][None]                                          # key-padding bias
    m = jnp.max(s, axis=-1, keepdims=True)
    e = jnp.exp(s - m)
    p = e * pl.reciprocal(jnp.sum(e, axis=-1, keepdims=True), approx=True)
    ctx = jnp.einsum('hqk,hkd->hqd', p.astype(jnp.bfloat16), v_scr[...],
                     preferred_element_type=jnp.float32)                 # (H, L, dv)

    # concat heads into (L, H*dv) and do ONE output-projection matmul
    for h in range(n_head):
        ctx_scr[:, h * d_v:(h + 1) * d_v] = ctx[h].astype(jnp.bfloat16)
    attn_out = jnp.dot(ctx_scr[...], wfc_ref[0], preferred_element_type=jnp.float32)

    x1 = _layernorm(attn_out + x, ln1g_ref[0], ln1b_ref[0])              # residual + LN

    # ---- position-wise feed-forward ----
    h1 = jnp.dot(x1.astype(jnp.bfloat16), w1_ref[0],
                 preferred_element_type=jnp.float32) + b1_ref[0]
    h1 = jnp.where(h1 >= 0, h1, 0.01 * h1)                               # leaky_relu (0.01)
    y = jnp.dot(h1.astype(jnp.bfloat16), w2_ref[0],
                preferred_element_type=jnp.float32) + b2_ref[0]
    x2 = _layernorm(y + x1, ln2g_ref[0], ln2b_ref[0])                    # residual + LN

    x_scr[...] = x2                                                      # carry to next layer

    @pl.when(l == n_l - 1)
    def _():
        o_ref[0] = x2


# ----------------------------- wrapper -----------------------------------------

def transformer_encoder(src_seq, src_mask, pos_table, outer_ln, stacked,
                        n_head, d_k, d_v):
    B, L, D = src_seq.shape
    n_layers = stacked["wqkv"].shape[0]
    hdv = n_head * d_v
    W3 = stacked["wqkv"].shape[-1]        # 2*hdk + hdv
    DI = stacked["w1"].shape[-1]

    kernel = functools.partial(fused_encoder_kernel, n_head, d_k, d_v)
    return pl.pallas_call(
        kernel,
        out_shape=jax.ShapeDtypeStruct((B, L, D), jnp.float32),
        grid=(B, n_layers),
        in_specs=[
            pl.BlockSpec((1, L, D), lambda b, l: (b, 0, 0)),      # src_seq
            pl.BlockSpec((1, L, D), lambda b, l: (0, 0, 0)),      # pos table (sliced to L)
            pl.BlockSpec((1, 1, L), lambda b, l: (b, 0, 0)),      # padding mask
            pl.BlockSpec((1, D), lambda b, l: (0, 0)),            # outer LN gamma
            pl.BlockSpec((1, D), lambda b, l: (0, 0)),            # outer LN beta
            pl.BlockSpec((1, D, W3), lambda b, l: (l, 0, 0)),     # fused Wq|Wk|Wv (bf16)
            pl.BlockSpec((1, hdv, D), lambda b, l: (l, 0, 0)),    # Wfc (bf16)
            pl.BlockSpec((1, 1, D), lambda b, l: (l, 0, 0)),      # ln1 gamma
            pl.BlockSpec((1, 1, D), lambda b, l: (l, 0, 0)),      # ln1 beta
            pl.BlockSpec((1, D, DI), lambda b, l: (l, 0, 0)),     # W1 (bf16)
            pl.BlockSpec((1, 1, DI), lambda b, l: (l, 0, 0)),     # b1
            pl.BlockSpec((1, DI, D), lambda b, l: (l, 0, 0)),     # W2 (bf16)
            pl.BlockSpec((1, 1, D), lambda b, l: (l, 0, 0)),      # b2
            pl.BlockSpec((1, 1, D), lambda b, l: (l, 0, 0)),      # ln2 gamma
            pl.BlockSpec((1, 1, D), lambda b, l: (l, 0, 0)),      # ln2 beta
        ],
        out_specs=pl.BlockSpec((1, L, D), lambda b, l: (b, 0, 0)),
        scratch_shapes=[
            pltpu.VMEM((L, D), jnp.float32),                      # activation carry
            pltpu.VMEM((1, L), jnp.float32),                      # cached additive mask bias
            pltpu.VMEM((n_head, L, d_k), jnp.bfloat16),           # q (head-major)
            pltpu.VMEM((n_head, L, d_k), jnp.bfloat16),           # k (head-major)
            pltpu.VMEM((n_head, L, d_v), jnp.bfloat16),           # v (head-major)
            pltpu.VMEM((L, hdv), jnp.bfloat16),                   # concat'd head outputs
        ],
        compiler_params=pltpu.CompilerParams(
            dimension_semantics=("parallel", "arbitrary"),
            vmem_limit_bytes=32 * 1024 * 1024,
        ),
    )(src_seq, pos_table[:, :L, :], src_mask,
      outer_ln["g"], outer_ln["b"],
      stacked["wqkv"], stacked["wfc"],
      stacked["ln1_g"], stacked["ln1_b"],
      stacked["w1"], stacked["b1"], stacked["w2"], stacked["b2"],
      stacked["ln2_g"], stacked["ln2_b"])


# ----------------------------- setup / reference --------------------------------

def sinusoid_table(n_position, d_hid):
    position = np.arange(n_position, dtype=np.float32)[:, None]
    div_term = np.exp(np.arange(0, d_hid, 2, dtype=np.float32)
                      * -(np.log(10000.0) / d_hid))
    table = np.zeros((n_position, d_hid), dtype=np.float32)
    table[:, 0::2] = np.sin(position * div_term)
    table[:, 1::2] = np.cos(position * div_term)
    return jnp.asarray(table[None, :, :])


def init_params(key, n_layers, d_model, d_inner, n_head, d_k, d_v):
    s = 0.05
    hdk, hdv = n_head * d_k, n_head * d_v
    wqkv, wfc, w1, w2, b1, b2 = [], [], [], [], [], []
    g1, bt1, g2, bt2 = [], [], [], []
    for k in jax.random.split(key, n_layers):
        ks = jax.random.split(k, 10)
        wq = jax.random.normal(ks[0], (d_model, hdk), jnp.float32) * s
        wk = jax.random.normal(ks[1], (d_model, hdk), jnp.float32) * s
        wv = jax.random.normal(ks[2], (d_model, hdv), jnp.float32) * s
        wqkv.append(jnp.concatenate([wq, wk, wv], axis=1))
        wfc.append(jax.random.normal(ks[3], (hdv, d_model), jnp.float32) * s)
        w1.append(jax.random.normal(ks[4], (d_model, d_inner), jnp.float32) * s)
        w2.append(jax.random.normal(ks[5], (d_inner, d_model), jnp.float32) * s)
        b1.append(jax.random.normal(ks[6], (1, d_inner), jnp.float32) * 0.05)
        b2.append(jax.random.normal(ks[7], (1, d_model), jnp.float32) * 0.05)
        g1.append(1.0 + jax.random.normal(ks[8], (1, d_model), jnp.float32) * 0.1)
        bt1.append(jax.random.normal(ks[8], (1, d_model), jnp.float32) * 0.1)
        g2.append(1.0 + jax.random.normal(ks[9], (1, d_model), jnp.float32) * 0.1)
        bt2.append(jax.random.normal(ks[9], (1, d_model), jnp.float32) * 0.1)
    return {
        "wqkv": jnp.stack(wqkv).astype(jnp.bfloat16),   # matmul weights stored in bf16
        "wfc": jnp.stack(wfc).astype(jnp.bfloat16),
        "w1": jnp.stack(w1).astype(jnp.bfloat16),
        "w2": jnp.stack(w2).astype(jnp.bfloat16),
        "b1": jnp.stack(b1), "b2": jnp.stack(b2),
        "ln1_g": jnp.stack(g1), "ln1_b": jnp.stack(bt1),
        "ln2_g": jnp.stack(g2), "ln2_b": jnp.stack(bt2),
    }


def ref_layernorm(x, g, b, eps=1e-6):
    m = jnp.mean(x, axis=-1, keepdims=True)
    v = jnp.mean((x - m) ** 2, axis=-1, keepdims=True)
    return (x - m) / jnp.sqrt(v + eps) * g + b


def ref_forward(src_seq, src_mask, pos_table, outer_ln, stacked, n_head, d_k, d_v):
    # Pure-JAX f32 reference of the PyTorch module (eval mode).
    B, L, D = src_seq.shape
    hdk, hdv = n_head * d_k, n_head * d_v
    x = ref_layernorm(src_seq + pos_table[:, :L, :], outer_ln["g"], outer_ln["b"])
    n_layers = stacked["wqkv"].shape[0]
    for i in range(n_layers):
        wqkv = stacked["wqkv"][i].astype(jnp.float32)
        wq, wk, wv = wqkv[:, :hdk], wqkv[:, hdk:2 * hdk], wqkv[:, 2 * hdk:]
        fc = stacked["wfc"][i].astype(jnp.float32)
        q = (x @ wq).reshape(B, L, n_head, d_k).transpose(0, 2, 1, 3)
        k = (x @ wk).reshape(B, L, n_head, d_k).transpose(0, 2, 1, 3)
        v = (x @ wv).reshape(B, L, n_head, d_v).transpose(0, 2, 1, 3)
        attn = jnp.einsum("bhqd,bhkd->bhqk", q / (d_k ** 0.5), k)
        attn = jnp.where(src_mask[:, None, :, :] == 0, -1000000000.0, attn)
        attn = jax.nn.softmax(attn, axis=-1)
        o = jnp.einsum("bhqk,bhkd->bhqd", attn, v)
        o = o.transpose(0, 2, 1, 3).reshape(B, L, hdv) @ fc
        x = ref_layernorm(o + x, stacked["ln1_g"][i], stacked["ln1_b"][i])
        h = x @ stacked["w1"][i].astype(jnp.float32) + stacked["b1"][i]
        h = jnp.where(h >= 0, h, 0.01 * h)
        y = h @ stacked["w2"][i].astype(jnp.float32) + stacked["b2"][i]
        x = ref_layernorm(y + x, stacked["ln2_g"][i], stacked["ln2_b"][i])
    return x


# ----------------------------- main ---------------------------------------------

if __name__ == "__main__":
    B, L = 2, 8
    d_model, d_inner = 32, 64
    n_head, d_k, d_v = 4, 8, 8
    n_layers = 2
    n_position = 16

    key = jax.random.PRNGKey(0)
    k_x, k_ln, k_p = jax.random.split(key, 3)

    src_seq = jax.random.normal(k_x, (B, L, d_model), jnp.float32)
    # padding mask (B, 1, L): last two key positions of batch element 1 are padded
    mask_np = np.ones((B, 1, L), dtype=np.float32)
    mask_np[1, 0, -2:] = 0.0
    src_mask = jnp.asarray(mask_np)

    pos_table = sinusoid_table(n_position, d_model)
    outer_ln = {
        "g": 1.0 + jax.random.normal(k_ln, (1, d_model), jnp.float32) * 0.1,
        "b": jax.random.normal(k_ln, (1, d_model), jnp.float32) * 0.1,
    }
    stacked = init_params(k_p, n_layers, d_model, d_inner, n_head, d_k, d_v)

    out = transformer_encoder(src_seq, src_mask, pos_table, outer_ln, stacked,
                              n_head, d_k, d_v)
    out = jax.block_until_ready(out)

    ref = ref_forward(src_seq, src_mask, pos_table, outer_ln, stacked,
                      n_head, d_k, d_v)
    # tolerance widened vs pure-f32 reference because matmul operands run in bf16
    np.testing.assert_allclose(np.asarray(out), np.asarray(ref), rtol=2e-2, atol=2e-2)
    print("KERNEL_OK")
</pallas_src>

<mosaic_0001>
module attributes {stable_mosaic.version = 11 : i64} {
  func.func @fused_encoder_kernel(%arg0: i32, %arg1: i32, %arg2: memref<1x8x32xf32, #tpu.memory_space<vmem>>, %arg3: memref<1x8x32xf32, #tpu.memory_space<vmem>>, %arg4: memref<1x1x8xf32, #tpu.memory_space<vmem>>, %arg5: memref<1x32xf32, #tpu.memory_space<vmem>>, %arg6: memref<1x32xf32, #tpu.memory_space<vmem>>, %arg7: memref<1x32x96xbf16, #tpu.memory_space<vmem>>, %arg8: memref<1x32x32xbf16, #tpu.memory_space<vmem>>, %arg9: memref<1x1x32xf32, #tpu.memory_space<vmem>>, %arg10: memref<1x1x32xf32, #tpu.memory_space<vmem>>, %arg11: memref<1x32x64xbf16, #tpu.memory_space<vmem>>, %arg12: memref<1x1x64xf32, #tpu.memory_space<vmem>>, %arg13: memref<1x64x32xbf16, #tpu.memory_space<vmem>>, %arg14: memref<1x1x32xf32, #tpu.memory_space<vmem>>, %arg15: memref<1x1x32xf32, #tpu.memory_space<vmem>>, %arg16: memref<1x1x32xf32, #tpu.memory_space<vmem>>, %arg17: memref<1x8x32xf32, #tpu.memory_space<vmem>>, %arg18: memref<8x32xf32, #tpu.memory_space<vmem>>, %arg19: memref<1x8xf32, #tpu.memory_space<vmem>>, %arg20: memref<4x8x8xbf16, #tpu.memory_space<vmem>>, %arg21: memref<4x8x8xbf16, #tpu.memory_space<vmem>>, %arg22: memref<4x8x8xbf16, #tpu.memory_space<vmem>>, %arg23: memref<8x32xbf16, #tpu.memory_space<vmem>>) attributes {dimension_semantics = [#tpu.dimension_semantics<parallel>, #tpu.dimension_semantics<arbitrary>], iteration_bounds = array<i64: 2, 2>, scalar_prefetch = 0 : i64, scratch_operands = 6 : i64, tpu.core_type = #tpu.core_type<tc>, window_params = [{transform_indices = @transform_0, window_bounds = array<i64: 1, 8, 32>}, {pipeline_mode = #tpu.pipeline_mode<synchronous>, transform_indices = @transform_1, window_bounds = array<i64: 1, 8, 32>}, {transform_indices = @transform_2, window_bounds = array<i64: 1, 1, 8>}, {pipeline_mode = #tpu.pipeline_mode<synchronous>, transform_indices = @transform_3, window_bounds = array<i64: 1, 32>}, {pipeline_mode = #tpu.pipeline_mode<synchronous>, transform_indices = @transform_4, window_bounds = array<i64: 1, 32>}, {transform_indices = @transform_5, window_bounds = array<i64: 1, 32, 96>}, {transform_indices = @transform_6, window_bounds = array<i64: 1, 32, 32>}, {transform_indices = @transform_7, window_bounds = array<i64: 1, 1, 32>}, {transform_indices = @transform_8, window_bounds = array<i64: 1, 1, 32>}, {transform_indices = @transform_9, window_bounds = array<i64: 1, 32, 64>}, {transform_indices = @transform_10, window_bounds = array<i64: 1, 1, 64>}, {transform_indices = @transform_11, window_bounds = array<i64: 1, 64, 32>}, {transform_indices = @transform_12, window_bounds = array<i64: 1, 1, 32>}, {transform_indices = @transform_13, window_bounds = array<i64: 1, 1, 32>}, {transform_indices = @transform_14, window_bounds = array<i64: 1, 1, 32>}, {transform_indices = @transform_15, window_bounds = array<i64: 1, 8, 32>}]} {
    %c0_i32 = arith.constant 0 : i32
    %0 = arith.cmpi eq, %arg1, %c0_i32 : i32
    %1 = arith.extui %0 : i1 to i32
    %c0_i32_0 = arith.constant 0 : i32
    %2 = arith.cmpi ne, %1, %c0_i32_0 : i32
    scf.if %2 {
      %c0_109 = arith.constant 0 : index
      %c0_110 = arith.constant 0 : index
      %c0_111 = arith.constant 0 : index
      %195 = vector.load %arg2[%c0_109, %c0_110, %c0_111] : memref<1x8x32xf32, #tpu.memory_space<vmem>>, vector<1x8x32xf32>
      %196 = vector.shape_cast %195 : vector<1x8x32xf32> to vector<8x32xf32>
      %c0_112 = arith.constant 0 : index
      %c0_113 = arith.constant 0 : index
      %c0_114 = arith.constant 0 : index
      %197 = vector.load %arg3[%c0_112, %c0_113, %c0_114] : memref<1x8x32xf32, #tpu.memory_space<vmem>>, vector<1x8x32xf32>
      %198 = vector.shape_cast %197 : vector<1x8x32xf32> to vector<8x32xf32>
      %199 = arith.addf %196, %198 : vector<8x32xf32>
      %c0_115 = arith.constant 0 : index
      %c0_116 = arith.constant 0 : index
      %200 = vector.load %arg5[%c0_115, %c0_116] : memref<1x32xf32, #tpu.memory_space<vmem>>, vector<1x32xf32>
      %c0_117 = arith.constant 0 : index
      %c0_118 = arith.constant 0 : index
      %201 = vector.load %arg6[%c0_117, %c0_118] : memref<1x32xf32, #tpu.memory_space<vmem>>, vector<1x32xf32>
      %cst_119 = arith.constant dense<0.000000e+00> : vector<8xf32>
      %202 = vector.multi_reduction <add>, %199, %cst_119 [1] : vector<8x32xf32> to vector<8xf32>
      %203 = vector.shape_cast %202 : vector<8xf32> to vector<8x1xf32>
      %cst_120 = arith.constant 3.200000e+01 : f32
      %204 = vector.broadcast %cst_120 : f32 to vector<8x1xf32>
      %205 = arith.divf %203, %204 : vector<8x1xf32>
      %206 = vector.broadcast %205 : vector<8x1xf32> to vector<8x32xf32>
      %207 = arith.subf %199, %206 : vector<8x32xf32>
      %208 = arith.mulf %207, %207 : vector<8x32xf32>
      %cst_121 = arith.constant dense<0.000000e+00> : vector<8xf32>
      %209 = vector.multi_reduction <add>, %208, %cst_121 [1] : vector<8x32xf32> to vector<8xf32>
      %210 = vector.shape_cast %209 : vector<8xf32> to vector<8x1xf32>
      %cst_122 = arith.constant 3.200000e+01 : f32
      %211 = vector.broadcast %cst_122 : f32 to vector<8x1xf32>
      %212 = arith.divf %210, %211 : vector<8x1xf32>
      %213 = vector.broadcast %205 : vector<8x1xf32> to vector<8x32xf32>
      %214 = arith.subf %199, %213 : vector<8x32xf32>
      %cst_123 = arith.constant 9.99999997E-7 : f32
      %215 = vector.broadcast %cst_123 : f32 to vector<8x1xf32>
      %216 = arith.addf %212, %215 : vector<8x1xf32>
      %217 = math.rsqrt %216 : vector<8x1xf32>
      %218 = vector.broadcast %217 : vector<8x1xf32> to vector<8x32xf32>
      %219 = arith.mulf %214, %218 : vector<8x32xf32>
      %220 = vector.broadcast %200 : vector<1x32xf32> to vector<8x32xf32>
      %221 = arith.mulf %219, %220 : vector<8x32xf32>
      %222 = vector.broadcast %201 : vector<1x32xf32> to vector<8x32xf32>
      %223 = arith.addf %221, %222 : vector<8x32xf32>
      %c0_124 = arith.constant 0 : index
      %c0_125 = arith.constant 0 : index
      %224 = vector.load %arg18[%c0_124, %c0_125] : memref<8x32xf32, #tpu.memory_space<vmem>>, vector<8x32xf32>
      tpu.vector_store %arg18[%c0_124, %c0_125], %223 {strides = array<i32>} : memref<8x32xf32, #tpu.memory_space<vmem>>, vector<8x32xf32>,
      %c0_126 = arith.constant 0 : index
      %c0_127 = arith.constant 0 : index
      %c0_128 = arith.constant 0 : index
      %225 = vector.load %arg4[%c0_126, %c0_127, %c0_128] : memref<1x1x8xf32, #tpu.memory_space<vmem>>, vector<1x1x8xf32>
      %226 = vector.shape_cast %225 : vector<1x1x8xf32> to vector<1x8xf32>
      %cst_129 = arith.constant 0.000000e+00 : f32
      %227 = vector.broadcast %cst_129 : f32 to vector<1x8xf32>
      %228 = arith.cmpf oeq, %226, %227 : vector<1x8xf32>
      %cst_130 = arith.constant -1.000000e+09 : f32
      %cst_131 = arith.constant 0.000000e+00 : f32
      %229 = vector.broadcast %cst_130 : f32 to vector<1x8xf32>
      %230 = vector.broadcast %cst_131 : f32 to vector<1x8xf32>
      %231 = arith.select %228, %229, %230 : vector<1x8xi1>, vector<1x8xf32>
      %c0_132 = arith.constant 0 : index
      %c0_133 = arith.constant 0 : index
      %232 = vector.load %arg19[%c0_132, %c0_133] : memref<1x8xf32, #tpu.memory_space<vmem>>, vector<1x8xf32>
      tpu.vector_store %arg19[%c0_132, %c0_133], %231 {strides = array<i32>} : memref<1x8xf32, #tpu.memory_space<vmem>>, vector<1x8xf32>,
    } else {
    }
    %c0 = arith.constant 0 : index
    %c0_1 = arith.constant 0 : index
    %3 = vector.load %arg18[%c0, %c0_1] : memref<8x32xf32, #tpu.memory_space<vmem>>, vector<8x32xf32>
    %4 = arith.truncf %3 : vector<8x32xf32> to vector<8x32xbf16>
    %c0_2 = arith.constant 0 : index
    %c0_3 = arith.constant 0 : index
    %c0_4 = arith.constant 0 : index
    %5 = vector.load %arg7[%c0_2, %c0_3, %c0_4] : memref<1x32x96xbf16, #tpu.memory_space<vmem>>, vector<1x32x96xbf16>
    %6 = vector.shape_cast %5 : vector<1x32x96xbf16> to vector<32x96xbf16>
    %cst = arith.constant dense<0.000000e+00> : vector<8x96xf32>
    %7 = tpu.matmul %4, %6, %cst {dimension_numbers = #tpu.dot_dimension_numbers<[1], [0], [0], [1], [0, 0, 1, 1], [], []>} : vector<8x32xbf16>, vector<32x96xbf16>, vector<8x96xf32> -> vector<8x96xf32>
    %8 = vector.extract_strided_slice %7 {offsets = [0, 0], sizes = [8, 8], strides = [1, 1]} : vector<8x96xf32> to vector<8x8xf32>
    %cst_5 = arith.constant 0.353553385 : f32
    %9 = vector.broadcast %cst_5 : f32 to vector<8x8xf32>
    %10 = arith.mulf %8, %9 : vector<8x8xf32>
    %11 = arith.truncf %10 : vector<8x8xf32> to vector<8x8xbf16>
    %c0_6 = arith.constant 0 : index
    %c0_7 = arith.constant 0 : index
    %c0_8 = arith.constant 0 : index
    %12 = vector.load %arg20[%c0_6, %c0_7, %c0_8] : memref<4x8x8xbf16, #tpu.memory_space<vmem>>, vector<1x8x8xbf16>
    %13 = vector.shape_cast %12 : vector<1x8x8xbf16> to vector<8x8xbf16>
    %14 = vector.shape_cast %11 : vector<8x8xbf16> to vector<1x8x8xbf16>
    tpu.vector_store %arg20[%c0_6, %c0_7, %c0_8], %14 {strides = array<i32>} : memref<4x8x8xbf16, #tpu.memory_space<vmem>>, vector<1x8x8xbf16>,
    %15 = vector.extract_strided_slice %7 {offsets = [0, 32], sizes = [8, 8], strides = [1, 1]} : vector<8x96xf32> to vector<8x8xf32>
    %16 = arith.truncf %15 : vector<8x8xf32> to vector<8x8xbf16>
    %c0_9 = arith.constant 0 : index
    %c0_10 = arith.constant 0 : index
    %c0_11 = arith.constant 0 : index
    %17 = vector.load %arg21[%c0_9, %c0_10, %c0_11] : memref<4x8x8xbf16, #tpu.memory_space<vmem>>, vector<1x8x8xbf16>
    %18 = vector.shape_cast %17 : vector<1x8x8xbf16> to vector<8x8xbf16>
    %19 = vector.shape_cast %16 : vector<8x8xbf16> to vector<1x8x8xbf16>
    tpu.vector_store %arg21[%c0_9, %c0_10, %c0_11], %19 {strides = array<i32>} : memref<4x8x8xbf16, #tpu.memory_space<vmem>>, vector<1x8x8xbf16>,
    %20 = vector.extract_strided_slice %7 {offsets = [0, 64], sizes = [8, 8], strides = [1, 1]} : vector<8x96xf32> to vector<8x8xf32>
    %21 = arith.truncf %20 : vector<8x8xf32> to vector<8x8xbf16>
    %c0_12 = arith.constant 0 : index
    %c0_13 = arith.constant 0 : index
    %c0_14 = arith.constant 0 : index
    %22 = vector.load %arg22[%c0_12, %c0_13, %c0_14] : memref<4x8x8xbf16, #tpu.memory_space<vmem>>, vector<1x8x8xbf16>
    %23 = vector.shape_cast %22 : vector<1x8x8xbf16> to vector<8x8xbf16>
    %24 = vector.shape_cast %21 : vector<8x8xbf16> to vector<1x8x8xbf16>
    tpu.vector_store %arg22[%c0_12, %c0_13, %c0_14], %24 {strides = array<i32>} : memref<4x8x8xbf16, #tpu.memory_space<vmem>>, vector<1x8x8xbf16>,
    %25 = vector.extract_strided_slice %7 {offsets = [0, 8], sizes = [8, 8], strides = [1, 1]} : vector<8x96xf32> to vector<8x8xf32>
    %cst_15 = arith.constant 0.353553385 : f32
    %26 = vector.broadcast %cst_15 : f32 to vector<8x8xf32>
    %27 = arith.mulf %25, %26 : vector<8x8xf32>
    %28 = arith.truncf %27 : vector<8x8xf32> to vector<8x8xbf16>
    %c1 = arith.constant 1 : index
    %c0_16 = arith.constant 0 : index
    %c0_17 = arith.constant 0 : index
    %29 = vector.load %arg20[%c1, %c0_16, %c0_17] : memref<4x8x8xbf16, #tpu.memory_space<vmem>>, vector<1x8x8xbf16>
    %30 = vector.shape_cast %29 : vector<1x8x8xbf16> to vector<8x8xbf16>
    %31 = vector.shape_cast %28 : vector<8x8xbf16> to vector<1x8x8xbf16>
    tpu.vector_store %arg20[%c1, %c0_16, %c0_17], %31 {strides = array<i32>} : memref<4x8x8xbf16, #tpu.memory_space<vmem>>, vector<1x8x8xbf16>,
    %32 = vector.extract_strided_slice %7 {offsets = [0, 40], sizes = [8, 8], strides = [1, 1]} : vector<8x96xf32> to vector<8x8xf32>
    %33 = arith.truncf %32 : vector<8x8xf32> to vector<8x8xbf16>
    %c1_18 = arith.constant 1 : index
    %c0_19 = arith.constant 0 : index
    %c0_20 = arith.constant 0 : index
    %34 = vector.load %arg21[%c1_18, %c0_19, %c0_20] : memref<4x8x8xbf16, #tpu.memory_space<vmem>>, vector<1x8x8xbf16>
    %35 = vector.shape_cast %34 : vector<1x8x8xbf16> to vector<8x8xbf16>
    %36 = vector.shape_cast %33 : vector<8x8xbf16> to vector<1x8x8xbf16>
    tpu.vector_store %arg21[%c1_18, %c0_19, %c0_20], %36 {strides = array<i32>} : memref<4x8x8xbf16, #tpu.memory_space<vmem>>, vector<1x8x8xbf16>,
    %37 = vector.extract_strided_slice %7 {offsets = [0, 72], sizes = [8, 8], strides = [1, 1]} : vector<8x96xf32> to vector<8x8xf32>
    %38 = arith.truncf %37 : vector<8x8xf32> to vector<8x8xbf16>
    %c1_21 = arith.constant 1 : index
    %c0_22 = arith.constant 0 : index
    %c0_23 = arith.constant 0 : index
    %39 = vector.load %arg22[%c1_21, %c0_22, %c0_23] : memref<4x8x8xbf16, #tpu.memory_space<vmem>>, vector<1x8x8xbf16>
    %40 = vector.shape_cast %39 : vector<1x8x8xbf16> to vector<8x8xbf16>
    %41 = vector.shape_cast %38 : vector<8x8xbf16> to vector<1x8x8xbf16>
    tpu.vector_store %arg22[%c1_21, %c0_22, %c0_23], %41 {strides = array<i32>} : memref<4x8x8xbf16, #tpu.memory_space<vmem>>, vector<1x8x8xbf16>,
    %42 = vector.extract_strided_slice %7 {offsets = [0, 16], sizes = [8, 8], strides = [1, 1]} : vector<8x96xf32> to vector<8x8xf32>
    %cst_24 = arith.constant 0.353553385 : f32
    %43 = vector.broadcast %cst_24 : f32 to vector<8x8xf32>
    %44 = arith.mulf %42, %43 : vector<8x8xf32>
    %45 = arith.truncf %44 : vector<8x8xf32> to vector<8x8xbf16>
    %c2 = arith.constant 2 : index
    %c0_25 = arith.constant 0 : index
    %c0_26 = arith.constant 0 : index
    %46 = vector.load %arg20[%c2, %c0_25, %c0_26] : memref<4x8x8xbf16, #tpu.memory_space<vmem>>, vector<1x8x8xbf16>
    %47 = vector.shape_cast %46 : vector<1x8x8xbf16> to vector<8x8xbf16>
    %48 = vector.shape_cast %45 : vector<8x8xbf16> to vector<1x8x8xbf16>
    tpu.vector_store %arg20[%c2, %c0_25, %c0_26], %48 {strides = array<i32>} : memref<4x8x8xbf16, #tpu.memory_space<vmem>>, vector<1x8x8xbf16>,
    %49 = vector.extract_strided_slice %7 {offsets = [0, 48], sizes = [8, 8], strides = [1, 1]} : vector<8x96xf32> to vector<8x8xf32>
    %50 = arith.truncf %49 : vector<8x8xf32> to vector<8x8xbf16>
    %c2_27 = arith.constant 2 : index
    %c0_28 = arith.constant 0 : index
    %c0_29 = arith.constant 0 : index
    %51 = vector.load %arg21[%c2_27, %c0_28, %c0_29] : memref<4x8x8xbf16, #tpu.memory_space<vmem>>, vector<1x8x8xbf16>
    %52 = vector.shape_cast %51 : vector<1x8x8xbf16> to vector<8x8xbf16>
    %53 = vector.shape_cast %50 : vector<8x8xbf16> to vector<1x8x8xbf16>
    tpu.vector_store %arg21[%c2_27, %c0_28, %c0_29], %53 {strides = array<i32>} : memref<4x8x8xbf16, #tpu.memory_space<vmem>>, vector<1x8x8xbf16>,
    %54 = vector.extract_strided_slice %7 {offsets = [0, 80], sizes = [8, 8], strides = [1, 1]} : vector<8x96xf32> to vector<8x8xf32>
    %55 = arith.truncf %54 : vector<8x8xf32> to vector<8x8xbf16>
    %c2_30 = arith.constant 2 : index
    %c0_31 = arith.constant 0 : index
    %c0_32 = arith.constant 0 : index
    %56 = vector.load %arg22[%c2_30, %c0_31, %c0_32] : memref<4x8x8xbf16, #tpu.memory_space<vmem>>, vector<1x8x8xbf16>
    %57 = vector.shape_cast %56 : vector<1x8x8xbf16> to vector<8x8xbf16>
    %58 = vector.shape_cast %55 : vector<8x8xbf16> to vector<1x8x8xbf16>
    tpu.vector_store %arg22[%c2_30, %c0_31, %c0_32], %58 {strides = array<i32>} : memref<4x8x8xbf16, #tpu.memory_space<vmem>>, vector<1x8x8xbf16>,
    %59 = vector.extract_strided_slice %7 {offsets = [0, 24], sizes = [8, 8], strides = [1, 1]} : vector<8x96xf32> to vector<8x8xf32>
    %cst_33 = arith.constant 0.353553385 : f32
    %60 = vector.broadcast %cst_33 : f32 to vector<8x8xf32>
    %61 = arith.mulf %59, %60 : vector<8x8xf32>
    %62 = arith.truncf %61 : vector<8x8xf32> to vector<8x8xbf16>
    %c3 = arith.constant 3 : index
    %c0_34 = arith.constant 0 : index
    %c0_35 = arith.constant 0 : index
    %63 = vector.load %arg20[%c3, %c0_34, %c0_35] : memref<4x8x8xbf16, #tpu.memory_space<vmem>>, vector<1x8x8xbf16>
    %64 = vector.shape_cast %63 : vector<1x8x8xbf16> to vector<8x8xbf16>
    %65 = vector.shape_cast %62 : vector<8x8xbf16> to vector<1x8x8xbf16>
    tpu.vector_store %arg20[%c3, %c0_34, %c0_35], %65 {strides = array<i32>} : memref<4x8x8xbf16, #tpu.memory_space<vmem>>, vector<1x8x8xbf16>,
    %66 = vector.extract_strided_slice %7 {offsets = [0, 56], sizes = [8, 8], strides = [1, 1]} : vector<8x96xf32> to vector<8x8xf32>
    %67 = arith.truncf %66 : vector<8x8xf32> to vector<8x8xbf16>
    %c3_36 = arith.constant 3 : index
    %c0_37 = arith.constant 0 : index
    %c0_38 = arith.constant 0 : index
    %68 = vector.load %arg21[%c3_36, %c0_37, %c0_38] : memref<4x8x8xbf16, #tpu.memory_space<vmem>>, vector<1x8x8xbf16>
    %69 = vector.shape_cast %68 : vector<1x8x8xbf16> to vector<8x8xbf16>
    %70 = vector.shape_cast %67 : vector<8x8xbf16> to vector<1x8x8xbf16>
    tpu.vector_store %arg21[%c3_36, %c0_37, %c0_38], %70 {strides = array<i32>} : memref<4x8x8xbf16, #tpu.memory_space<vmem>>, vector<1x8x8xbf16>,
    %71 = vector.extract_strided_slice %7 {offsets = [0, 88], sizes = [8, 8], strides = [1, 1]} : vector<8x96xf32> to vector<8x8xf32>
    %72 = arith.truncf %71 : vector<8x8xf32> to vector<8x8xbf16>
    %c3_39 = arith.constant 3 : index
    %c0_40 = arith.constant 0 : index
    %c0_41 = arith.constant 0 : index
    %73 = vector.load %arg22[%c3_39, %c0_40, %c0_41] : memref<4x8x8xbf16, #tpu.memory_space<vmem>>, vector<1x8x8xbf16>
    %74 = vector.shape_cast %73 : vector<1x8x8xbf16> to vector<8x8xbf16>
    %75 = vector.shape_cast %72 : vector<8x8xbf16> to vector<1x8x8xbf16>
    tpu.vector_store %arg22[%c3_39, %c0_40, %c0_41], %75 {strides = array<i32>} : memref<4x8x8xbf16, #tpu.memory_space<vmem>>, vector<1x8x8xbf16>,
    %c0_42 = arith.constant 0 : index
    %c0_43 = arith.constant 0 : index
    %c0_44 = arith.constant 0 : index
    %76 = vector.load %arg20[%c0_42, %c0_43, %c0_44] : memref<4x8x8xbf16, #tpu.memory_space<vmem>>, vector<4x8x8xbf16>
    %c0_45 = arith.constant 0 : index
    %c0_46 = arith.constant 0 : index
    %c0_47 = arith.constant 0 : index
    %77 = vector.load %arg21[%c0_45, %c0_46, %c0_47] : memref<4x8x8xbf16, #tpu.memory_space<vmem>>, vector<4x8x8xbf16>
    "tpu.trace_start"() <{level = 10 : i32, message = "hqd,hkd->hqk"}> : () -> ()
    %cst_48 = arith.constant dense<0.000000e+00> : vector<4x8x8xf32>
    %78 = tpu.matmul %76, %77, %cst_48 {dimension_numbers = #tpu.dot_dimension_numbers<[2], [2], [1], [1], [0, 0, 0, 1, 1, 1], [0], [0]>} : vector<4x8x8xbf16>, vector<4x8x8xbf16>, vector<4x8x8xf32> -> vector<4x8x8xf32>
    "tpu.trace_stop"() : () -> ()
    %c0_49 = arith.constant 0 : index
    %c0_50 = arith.constant 0 : index
    %79 = vector.load %arg19[%c0_49, %c0_50] : memref<1x8xf32, #tpu.memory_space<vmem>>, vector<1x8xf32>
    %80 = vector.shape_cast %79 : vector<1x8xf32> to vector<1x1x8xf32>
    %81 = vector.broadcast %80 : vector<1x1x8xf32> to vector<4x8x8xf32>
    %82 = arith.addf %78, %81 : vector<4x8x8xf32>
    %cst_51 = arith.constant dense<0xFF800000> : vector<4x8xf32>
    %83 = vector.multi_reduction <maximumf>, %82, %cst_51 [2] : vector<4x8x8xf32> to vector<4x8xf32>
    %84 = vector.shape_cast %83 : vector<4x8xf32> to vector<4x8x1xf32>
    %85 = vector.broadcast %84 : vector<4x8x1xf32> to vector<4x8x8xf32>
    %86 = arith.subf %82, %85 : vector<4x8x8xf32>
    %87 = math.exp %86 : vector<4x8x8xf32>
    %cst_52 = arith.constant dense<0.000000e+00> : vector<4x8xf32>
    %88 = vector.multi_reduction <add>, %87, %cst_52 [2] : vector<4x8x8xf32> to vector<4x8xf32>
    %89 = vector.shape_cast %88 : vector<4x8xf32> to vector<4x8x1xf32>
    %90 = tpu.reciprocal %89 {approx = true} : vector<4x8x1xf32> -> vector<4x8x1xf32>
    %91 = vector.broadcast %90 : vector<4x8x1xf32> to vector<4x8x8xf32>
    %92 = arith.mulf %87, %91 : vector<4x8x8xf32>
    %93 = arith.truncf %92 : vector<4x8x8xf32> to vector<4x8x8xbf16>
    %c0_53 = arith.constant 0 : index
    %c0_54 = arith.constant 0 : index
    %c0_55 = arith.constant 0 : index
    %94 = vector.load %arg22[%c0_53, %c0_54, %c0_55] : memref<4x8x8xbf16, #tpu.memory_space<vmem>>, vector<4x8x8xbf16>
    "tpu.trace_start"() <{level = 10 : i32, message = "hqk,hkd->hqd"}> : () -> ()
    %cst_56 = arith.constant dense<0.000000e+00> : vector<4x8x8xf32>
    %95 = tpu.matmul %93, %94, %cst_56 {dimension_numbers = #tpu.dot_dimension_numbers<[2], [1], [1], [2], [0, 0, 0, 1, 1, 2], [0], [0]>} : vector<4x8x8xbf16>, vector<4x8x8xbf16>, vector<4x8x8xf32> -> vector<4x8x8xf32>
    "tpu.trace_stop"() : () -> ()
    %96 = vector.extract_strided_slice %95 {offsets = [0, 0, 0], sizes = [1, 8, 8], strides = [1, 1, 1]} : vector<4x8x8xf32> to vector<1x8x8xf32>
    %97 = vector.shape_cast %96 : vector<1x8x8xf32> to vector<8x8xf32>
    %98 = arith.truncf %97 : vector<8x8xf32> to vector<8x8xbf16>
    %c0_57 = arith.constant 0 : index
    %c0_58 = arith.constant 0 : index
    %99 = vector.load %arg23[%c0_57, %c0_58] : memref<8x32xbf16, #tpu.memory_space<vmem>>, vector<8x8xbf16>
    tpu.vector_store %arg23[%c0_57, %c0_58], %98 {strides = array<i32>} : memref<8x32xbf16, #tpu.memory_space<vmem>>, vector<8x8xbf16>,
    %100 = vector.extract_strided_slice %95 {offsets = [1, 0, 0], sizes = [1, 8, 8], strides = [1, 1, 1]} : vector<4x8x8xf32> to vector<1x8x8xf32>
    %101 = vector.shape_cast %100 : vector<1x8x8xf32> to vector<8x8xf32>
    %102 = arith.truncf %101 : vector<8x8xf32> to vector<8x8xbf16>
    %c0_59 = arith.constant 0 : index
    %c8 = arith.constant 8 : index
    %103 = vector.load %arg23[%c0_59, %c8] : memref<8x32xbf16, #tpu.memory_space<vmem>>, vector<8x8xbf16>
    tpu.vector_store %arg23[%c0_59, %c8], %102 {strides = array<i32>} : memref<8x32xbf16, #tpu.memory_space<vmem>>, vector<8x8xbf16>,
    %104 = vector.extract_strided_slice %95 {offsets = [2, 0, 0], sizes = [1, 8, 8], strides = [1, 1, 1]} : vector<4x8x8xf32> to vector<1x8x8xf32>
    %105 = vector.shape_cast %104 : vector<1x8x8xf32> to vector<8x8xf32>
    %106 = arith.truncf %105 : vector<8x8xf32> to vector<8x8xbf16>
    %c0_60 = arith.constant 0 : index
    %c16 = arith.constant 16 : index
    %107 = vector.load %arg23[%c0_60, %c16] : memref<8x32xbf16, #tpu.memory_space<vmem>>, vector<8x8xbf16>
    tpu.vector_store %arg23[%c0_60, %c16], %106 {strides = array<i32>} : memref<8x32xbf16, #tpu.memory_space<vmem>>, vector<8x8xbf16>,
    %108 = vector.extract_strided_slice %95 {offsets = [3, 0, 0], sizes = [1, 8, 8], strides = [1, 1, 1]} : vector<4x8x8xf32> to vector<1x8x8xf32>
    %109 = vector.shape_cast %108 : vector<1x8x8xf32> to vector<8x8xf32>
    %110 = arith.truncf %109 : vector<8x8xf32> to vector<8x8xbf16>
    %c0_61 = arith.constant 0 : index
    %c24 = arith.constant 24 : index
    %111 = vector.load %arg23[%c0_61, %c24] : memref<8x32xbf16, #tpu.memory_space<vmem>>, vector<8x8xbf16>
    tpu.vector_store %arg23[%c0_61, %c24], %110 {strides = array<i32>} : memref<8x32xbf16, #tpu.memory_space<vmem>>, vector<8x8xbf16>,
    %c0_62 = arith.constant 0 : index
    %c0_63 = arith.constant 0 : index
    %112 = vector.load %arg23[%c0_62, %c0_63] : memref<8x32xbf16, #tpu.memory_space<vmem>>, vector<8x32xbf16>
    %c0_64 = arith.constant 0 : index
    %c0_65 = arith.constant 0 : index
    %c0_66 = arith.constant 0 : index
    %113 = vector.load %arg8[%c0_64, %c0_65, %c0_66] : memref<1x32x32xbf16, #tpu.memory_space<vmem>>, vector<1x32x32xbf16>
    %114 = vector.shape_cast %113 : vector<1x32x32xbf16> to vector<32x32xbf16>
    %cst_67 = arith.constant dense<0.000000e+00> : vector<8x32xf32>
    %115 = tpu.matmul %112, %114, %cst_67 {dimension_numbers = #tpu.dot_dimension_numbers<[1], [0], [0], [1], [0, 0, 1, 1], [], []>} : vector<8x32xbf16>, vector<32x32xbf16>, vector<8x32xf32> -> vector<8x32xf32>
    %116 = arith.addf %115, %3 : vector<8x32xf32>
    %c0_68 = arith.constant 0 : index
    %c0_69 = arith.constant 0 : index
    %c0_70 = arith.constant 0 : index
    %117 = vector.load %arg9[%c0_68, %c0_69, %c0_70] : memref<1x1x32xf32, #tpu.memory_space<vmem>>, vector<1x1x32xf32>
    %118 = vector.shape_cast %117 : vector<1x1x32xf32> to vector<1x32xf32>
    %c0_71 = arith.constant 0 : index
    %c0_72 = arith.constant 0 : index
    %c0_73 = arith.constant 0 : index
    %119 = vector.load %arg10[%c0_71, %c0_72, %c0_73] : memref<1x1x32xf32, #tpu.memory_space<vmem>>, vector<1x1x32xf32>
    %120 = vector.shape_cast %119 : vector<1x1x32xf32> to vector<1x32xf32>
    %cst_74 = arith.constant dense<0.000000e+00> : vector<8xf32>
    %121 = vector.multi_reduction <add>, %116, %cst_74 [1] : vector<8x32xf32> to vector<8xf32>
    %122 = vector.shape_cast %121 : vector<8xf32> to vector<8x1xf32>
    %cst_75 = arith.constant 3.200000e+01 : f32
    %123 = vector.broadcast %cst_75 : f32 to vector<8x1xf32>
    %124 = arith.divf %122, %123 : vector<8x1xf32>
    %125 = vector.broadcast %124 : vector<8x1xf32> to vector<8x32xf32>
    %126 = arith.subf %116, %125 : vector<8x32xf32>
    %127 = arith.mulf %126, %126 : vector<8x32xf32>
    %cst_76 = arith.constant dense<0.000000e+00> : vector<8xf32>
    %128 = vector.multi_reduction <add>, %127, %cst_76 [1] : vector<8x32xf32> to vector<8xf32>
    %129 = vector.shape_cast %128 : vector<8xf32> to vector<8x1xf32>
    %cst_77 = arith.constant 3.200000e+01 : f32
    %130 = vector.broadcast %cst_77 : f32 to vector<8x1xf32>
    %131 = arith.divf %129, %130 : vector<8x1xf32>
    %132 = vector.broadcast %124 : vector<8x1xf32> to vector<8x32xf32>
    %133 = arith.subf %116, %132 : vector<8x32xf32>
    %cst_78 = arith.constant 9.99999997E-7 : f32
    %134 = vector.broadcast %cst_78 : f32 to vector<8x1xf32>
    %135 = arith.addf %131, %134 : vector<8x1xf32>
    %136 = math.rsqrt %135 : vector<8x1xf32>
    %137 = vector.broadcast %136 : vector<8x1xf32> to vector<8x32xf32>
    %138 = arith.mulf %133, %137 : vector<8x32xf32>
    %139 = vector.broadcast %118 : vector<1x32xf32> to vector<8x32xf32>
    %140 = arith.mulf %138, %139 : vector<8x32xf32>
    %141 = vector.broadcast %120 : vector<1x32xf32> to vector<8x32xf32>
    %142 = arith.addf %140, %141 : vector<8x32xf32>
    %143 = arith.truncf %142 : vector<8x32xf32> to vector<8x32xbf16>
    %c0_79 = arith.constant 0 : index
    %c0_80 = arith.constant 0 : index
    %c0_81 = arith.constant 0 : index
    %144 = vector.load %arg11[%c0_79, %c0_80, %c0_81] : memref<1x32x64xbf16, #tpu.memory_space<vmem>>, vector<1x32x64xbf16>
    %145 = vector.shape_cast %144 : vector<1x32x64xbf16> to vector<32x64xbf16>
    %cst_82 = arith.constant dense<0.000000e+00> : vector<8x64xf32>
    %146 = tpu.matmul %143, %145, %cst_82 {dimension_numbers = #tpu.dot_dimension_numbers<[1], [0], [0], [1], [0, 0, 1, 1], [], []>} : vector<8x32xbf16>, vector<32x64xbf16>, vector<8x64xf32> -> vector<8x64xf32>
    %c0_83 = arith.constant 0 : index
    %c0_84 = arith.constant 0 : index
    %c0_85 = arith.constant 0 : index
    %147 = vector.load %arg12[%c0_83, %c0_84, %c0_85] : memref<1x1x64xf32, #tpu.memory_space<vmem>>, vector<1x1x64xf32>
    %148 = vector.shape_cast %147 : vector<1x1x64xf32> to vector<1x64xf32>
    %149 = vector.broadcast %148 : vector<1x64xf32> to vector<8x64xf32>
    %150 = arith.addf %146, %149 : vector<8x64xf32>
    %cst_86 = arith.constant 0.000000e+00 : f32
    %151 = vector.broadcast %cst_86 : f32 to vector<8x64xf32>
    %152 = arith.cmpf oge, %150, %151 : vector<8x64xf32>
    %cst_87 = arith.constant 0.00999999977 : f32
    %153 = vector.broadcast %cst_87 : f32 to vector<8x64xf32>
    %154 = arith.mulf %153, %150 : vector<8x64xf32>
    %155 = arith.select %152, %150, %154 : vector<8x64xi1>, vector<8x64xf32>
    %156 = arith.truncf %155 : vector<8x64xf32> to vector<8x64xbf16>
    %c0_88 = arith.constant 0 : index
    %c0_89 = arith.constant 0 : index
    %c0_90 = arith.constant 0 : index
    %157 = vector.load %arg13[%c0_88, %c0_89, %c0_90] : memref<1x64x32xbf16, #tpu.memory_space<vmem>>, vector<1x64x32xbf16>
    %158 = vector.shape_cast %157 : vector<1x64x32xbf16> to vector<64x32xbf16>
    %cst_91 = arith.constant dense<0.000000e+00> : vector<8x32xf32>
    %159 = tpu.matmul %156, %158, %cst_91 {dimension_numbers = #tpu.dot_dimension_numbers<[1], [0], [0], [1], [0, 0, 1, 1], [], []>} : vector<8x64xbf16>, vector<64x32xbf16>, vector<8x32xf32> -> vector<8x32xf32>
    %c0_92 = arith.constant 0 : index
    %c0_93 = arith.constant 0 : index
    %c0_94 = arith.constant 0 : index
    %160 = vector.load %arg14[%c0_92, %c0_93, %c0_94] : memref<1x1x32xf32, #tpu.memory_space<vmem>>, vector<1x1x32xf32>
    %161 = vector.shape_cast %160 : vector<1x1x32xf32> to vector<1x32xf32>
    %162 = vector.broadcast %161 : vector<1x32xf32> to vector<8x32xf32>
    %163 = arith.addf %159, %162 : vector<8x32xf32>
    %164 = arith.addf %163, %142 : vector<8x32xf32>
    %c0_95 = arith.constant 0 : index
    %c0_96 = arith.constant 0 : index
    %c0_97 = arith.constant 0 : index
    %165 = vector.load %arg15[%c0_95, %c0_96, %c0_97] : memref<1x1x32xf32, #tpu.memory_space<vmem>>, vector<1x1x32xf32>
    %166 = vector.shape_cast %165 : vector<1x1x32xf32> to vector<1x32xf32>
    %c0_98 = arith.constant 0 : index
    %c0_99 = arith.constant 0 : index
    %c0_100 = arith.constant 0 : index
    %167 = vector.load %arg16[%c0_98, %c0_99, %c0_100] : memref<1x1x32xf32, #tpu.memory_space<vmem>>, vector<1x1x32xf32>
    %168 = vector.shape_cast %167 : vector<1x1x32xf32> to vector<1x32xf32>
    %cst_101 = arith.constant dense<0.000000e+00> : vector<8xf32>
    %169 = vector.multi_reduction <add>, %164, %cst_101 [1] : vector<8x32xf32> to vector<8xf32>
    %170 = vector.shape_cast %169 : vector<8xf32> to vector<8x1xf32>
    %cst_102 = arith.constant 3.200000e+01 : f32
    %171 = vector.broadcast %cst_102 : f32 to vector<8x1xf32>
    %172 = arith.divf %170, %171 : vector<8x1xf32>
    %173 = vector.broadcast %172 : vector<8x1xf32> to vector<8x32xf32>
    %174 = arith.subf %164, %173 : vector<8x32xf32>
    %175 = arith.mulf %174, %174 : vector<8x32xf32>
    %cst_103 = arith.constant dense<0.000000e+00> : vector<8xf32>
    %176 = vector.multi_reduction <add>, %175, %cst_103 [1] : vector<8x32xf32> to vector<8xf32>
    %177 = vector.shape_cast %176 : vector<8xf32> to vector<8x1xf32>
    %cst_104 = arith.constant 3.200000e+01 : f32
    %178 = vector.broadcast %cst_104 : f32 to vector<8x1xf32>
    %179 = arith.divf %177, %178 : vector<8x1xf32>
    %180 = vector.broadcast %172 : vector<8x1xf32> to vector<8x32xf32>
    %181 = arith.subf %164, %180 : vector<8x32xf32>
    %cst_105 = arith.constant 9.99999997E-7 : f32
    %182 = vector.broadcast %cst_105 : f32 to vector<8x1xf32>
    %183 = arith.addf %179, %182 : vector<8x1xf32>
    %184 = math.rsqrt %183 : vector<8x1xf32>
    %185 = vector.broadcast %184 : vector<8x1xf32> to vector<8x32xf32>
    %186 = arith.mulf %181, %185 : vector<8x32xf32>
    %187 = vector.broadcast %166 : vector<1x32xf32> to vector<8x32xf32>
    %188 = arith.mulf %186, %187 : vector<8x32xf32>
    %189 = vector.broadcast %168 : vector<1x32xf32> to vector<8x32xf32>
    %190 = arith.addf %188, %189 : vector<8x32xf32>
    %c0_106 = arith.constant 0 : index
    %c0_107 = arith.constant 0 : index
    %191 = vector.load %arg18[%c0_106, %c0_107] : memref<8x32xf32, #tpu.memory_space<vmem>>, vector<8x32xf32>
    tpu.vector_store %arg18[%c0_106, %c0_107], %190 {strides = array<i32>} : memref<8x32xf32, #tpu.memory_space<vmem>>, vector<8x32xf32>,
    %c1_i32 = arith.constant 1 : i32
    %192 = arith.cmpi eq, %arg1, %c1_i32 : i32
    %193 = arith.extui %192 : i1 to i32
    %c0_i32_108 = arith.constant 0 : i32
    %194 = arith.cmpi ne, %193, %c0_i32_108 : i32
    scf.if %194 {
      %c0_109 = arith.constant 0 : index
      %c0_110 = arith.constant 0 : index
      %c0_111 = arith.constant 0 : index
      %195 = vector.load %arg17[%c0_109, %c0_110, %c0_111] : memref<1x8x32xf32, #tpu.memory_space<vmem>>, vector<1x8x32xf32>
      %196 = vector.shape_cast %195 : vector<1x8x32xf32> to vector<8x32xf32>
      %197 = vector.shape_cast %190 : vector<8x32xf32> to vector<1x8x32xf32>
      tpu.vector_store %arg17[%c0_109, %c0_110, %c0_111], %197 {strides = array<i32>} : memref<1x8x32xf32, #tpu.memory_space<vmem>>, vector<1x8x32xf32>,
    } else {
    }
    return
  }
  func.func @transform_0(%arg0: i32, %arg1: i32) -> (i32, i32, i32) {
    %c0_i32 = arith.constant 0 : i32
    %c0_i32_0 = arith.constant 0 : i32
    %c0_i32_1 = arith.constant 0 : i32
    return %arg0, %c0_i32, %c0_i32_0 : i32, i32, i32
  }
  func.func @transform_1(%arg0: i32, %arg1: i32) -> (i32, i32, i32) {
    %c0_i32 = arith.constant 0 : i32
    %c0_i32_0 = arith.constant 0 : i32
    %c0_i32_1 = arith.constant 0 : i32
    %c0_i32_2 = arith.constant 0 : i32
    return %c0_i32, %c0_i32_0, %c0_i32_1 : i32, i32, i32
  }
  func.func @transform_2(%arg0: i32, %arg1: i32) -> (i32, i32, i32) {
    %c0_i32 = arith.constant 0 : i32
    %c0_i32_0 = arith.constant 0 : i32
    %c0_i32_1 = arith.constant 0 : i32
    return %arg0, %c0_i32, %c0_i32_0 : i32, i32, i32
  }
  func.func @transform_3(%arg0: i32, %arg1: i32) -> (i32, i32) {
    %c0_i32 = arith.constant 0 : i32
    %c0_i32_0 = arith.constant 0 : i32
    %c0_i32_1 = arith.constant 0 : i32
    return %c0_i32, %c0_i32_0 : i32, i32
  }
  func.func @transform_4(%arg0: i32, %arg1: i32) -> (i32, i32) {
    %c0_i32 = arith.constant 0 : i32
    %c0_i32_0 = arith.constant 0 : i32
    %c0_i32_1 = arith.constant 0 : i32
    return %c0_i32, %c0_i32_0 : i32, i32
  }
  func.func @transform_5(%arg0: i32, %arg1: i32) -> (i32, i32, i32) {
    %c0_i32 = arith.constant 0 : i32
    %c0_i32_0 = arith.constant 0 : i32
    %c0_i32_1 = arith.constant 0 : i32
    return %arg1, %c0_i32, %c0_i32_0 : i32, i32, i32
  }
  func.func @transform_6(%arg0: i32, %arg1: i32) -> (i32, i32, i32) {
    %c0_i32 = arith.constant 0 : i32
    %c0_i32_0 = arith.constant 0 : i32
    %c0_i32_1 = arith.constant 0 : i32
    return %arg1, %c0_i32, %c0_i32_0 : i32, i32, i32
  }
  func.func @transform_7(%arg0: i32, %arg1: i32) -> (i32, i32, i32) {
    %c0_i32 = arith.constant 0 : i32
    %c0_i32_0 = arith.constant 0 : i32
    %c0_i32_1 = arith.constant 0 : i32
    return %arg1, %c0_i32, %c0_i32_0 : i32, i32, i32
  }
  func.func @transform_8(%arg0: i32, %arg1: i32) -> (i32, i32, i32) {
    %c0_i32 = arith.constant 0 : i32
    %c0_i32_0 = arith.constant 0 : i32
    %c0_i32_1 = arith.constant 0 : i32
    return %arg1, %c0_i32, %c0_i32_0 : i32, i32, i32
  }
  func.func @transform_9(%arg0: i32, %arg1: i32) -> (i32, i32, i32) {
    %c0_i32 = arith.constant 0 : i32
    %c0_i32_0 = arith.constant 0 : i32
    %c0_i32_1 = arith.constant 0 : i32
    return %arg1, %c0_i32, %c0_i32_0 : i32, i32, i32
  }
  func.func @transform_10(%arg0: i32, %arg1: i32) -> (i32, i32, i32) {
    %c0_i32 = arith.constant 0 : i32
    %c0_i32_0 = arith.constant 0 : i32
    %c0_i32_1 = arith.constant 0 : i32
    return %arg1, %c0_i32, %c0_i32_0 : i32, i32, i32
  }
  func.func @transform_11(%arg0: i32, %arg1: i32) -> (i32, i32, i32) {
    %c0_i32 = arith.constant 0 : i32
    %c0_i32_0 = arith.constant 0 : i32
    %c0_i32_1 = arith.constant 0 : i32
    return %arg1, %c0_i32, %c0_i32_0 : i32, i32, i32
  }
  func.func @transform_12(%arg0: i32, %arg1: i32) -> (i32, i32, i32) {
    %c0_i32 = arith.constant 0 : i32
    %c0_i32_0 = arith.constant 0 : i32
    %c0_i32_1 = arith.constant 0 : i32
    return %arg1, %c0_i32, %c0_i32_0 : i32, i32, i32
  }
  func.func @transform_13(%arg0: i32, %arg1: i32) -> (i32, i32, i32) {
    %c0_i32 = arith.constant 0 : i32
    %c0_i32_0 = arith.constant 0 : i32
    %c0_i32_1 = arith.constant 0 : i32
    return %arg1, %c0_i32, %c0_i32_0 : i32, i32, i32
  }
  func.func @transform_14(%arg0: i32, %arg1: i32) -> (i32, i32, i32) {
    %c0_i32 = arith.constant 0 : i32
    %c0_i32_0 = arith.constant 0 : i32
    %c0_i32_1 = arith.constant 0 : i32
    return %arg1, %c0_i32, %c0_i32_0 : i32, i32, i32
  }
  func.func @transform_15(%arg0: i32, %arg1: i32) -> (i32, i32, i32) {
    %c0_i32 = arith.constant 0 : i32
    %c0_i32_0 = arith.constant 0 : i32
    %c0_i32_1 = arith.constant 0 : i32
    return %arg0, %c0_i32, %c0_i32_0 : i32, i32, i32
  }
}

</mosaic_0001>

<bundles_post_ra>
// kernel: tpu_custom_call.1
= control target key start
LH: loop header
LB: loop body
LE: loop exit
PB: predicated region body
PF: predicated region fallthrough
CT: control target
= control target key end

     0   :  { %s2527_s0 = inlined_call_operand.hbm [shape: f32[2,8,32], index: 0, kind: input, shape index: {}]   ;;  %s2528_s1 = inlined_call_operand.hbm [shape: f32[1,8,32], index: 1, kind: input, shape index: {}]   ;;  %s2529_s2 = inlined_call_operand.hbm [shape: f32[2,1,8], index: 2, kind: input, shape index: {}]   ;;  %s2530_s3 = inlined_call_operand.vmem [shape: f32[1,32], index: 3, kind: input, shape index: {}]   ;;  %s2531_s4 = inlined_call_operand.hbm [shape: f32[1,32], index: 4, kind: input, shape index: {}]   ;;  %s2532_s5 = inlined_call_operand.vmem [shape: bf16[2,32,96], index: 5, kind: input, shape index: {}]   ;;  %s2533_s6 = inlined_call_operand.vmem [shape: bf16[2,32,32], index: 6, kind: input, shape index: {}]   ;;  %s2534_s7 = inlined_call_operand.vmem [shape: f32[2,1,32], index: 7, kind: input, shape index: {}]   ;;  %s2535_s8 = inlined_call_operand.vmem [shape: f32[2,1,32], index: 8, kind: input, shape index: {}]   ;;  %s2536_s9 = inlined_call_operand.vmem [shape: bf16[2,32,64], index: 9, kind: input, shape index: {}]   ;;  %s2537_s10 = inlined_call_operand.vmem [shape: f32[2,1,64], index: 10, kind: input, shape index: {}]   ;;  %s2538_s11 = inlined_call_operand.vmem [shape: bf16[2,64,32], index: 11, kind: input, shape index: {}]   ;;  %s2539_s12 = inlined_call_operand.vmem [shape: f32[2,1,32], index: 12, kind: input, shape index: {}]   ;;  %s2540_s13 = inlined_call_operand.vmem [shape: f32[2,1,32], index: 13, kind: input, shape index: {}]   ;;  %s2541_s14 = inlined_call_operand.vmem [shape: f32[2,1,32], index: 14, kind: input, shape index: {}]   ;;  %s2542_s15 = inlined_call_operand.hbm [shape: f32[2,8,32], index: 15, kind: output, shape index: {}]  }
   0x1   :  { %2553 = sst [smem:[#allocation32_spill]] %s2527_s0 }
   0x2   :  { %2554 = sst [smem:[#allocation33_spill]] %s2528_s1 }
   0x3   :  { %2555 = sst [smem:[#allocation34_spill]] %s2529_s2 }
   0x4   :  { %2556 = sst [smem:[#allocation35_spill]] %s2530_s3 }
   0x5   :  { %2557 = sst [smem:[#allocation36_spill]] %s2531_s4 }
   0x6   :  { %2558 = sst [smem:[#allocation37_spill]] %s2532_s5 }
   0x7   :  { %2559 = sst [smem:[#allocation38_spill]] %s2533_s6 }
   0x8   :  { %2560 = sst [smem:[#allocation39_spill]] %s2535_s8 }
   0x9   :  { %2561 = sst [smem:[#allocation40_spill]] %s2536_s9 }
   0xa   :  { %2562 = sst [smem:[#allocation41_spill]] %s2537_s10 }
   0xb   :  { %2563 = sst [smem:[#allocation42_spill]] %s2538_s11 }
   0xc   :  { %2564 = sst [smem:[#allocation43_spill]] %s2539_s12 }
   0xd   :  { %2565 = sst [smem:[#allocation44_spill]] %s2540_s13 }
   0xe   :  { %2566 = sst [smem:[#allocation45_spill]] %s2541_s14 }
   0xf   :  { %2567 = sst [smem:[#allocation46_spill]] %s2542_s15 }
  0x10   :  { %20 = vsyncpa [#allocation9], 0 }
  0x11   :  { %22 = vsyncpa [#allocation9 + $0x1], 0 }
  0x12   :  { %23 = vsyncpa [#allocation12], 0 }
  0x13   :  { %24 = vsyncpa [#allocation10], 0 }
  0x14   :  { %26 = vsyncpa [#allocation10 + $0x1], 0  ;;  %s2158_s18 = smov 0   ;;  %s2160_s19 = smov 0  }
  0x15   :  { %s2162_s20 = smov 0   ;;  %s2164_s21 = smov 0  }
  0x16   :  { %s2166_s22 = smov 0   ;;  %s2168_s23 = smov 0  }
  0x17   :  { %s2170_s24 = smov 0   ;;  %s2172_s25 = smov 0  }
  0x18 LB: > { %2568 = sst [smem:[#allocation21_spill]] %s2029_s18  ;;  %s2199_s26 = sadd.s32 4294967295, %s2057_s25   ;;  %s2057_s25 = sphi %s2172_s25, %s32_s25   ;;  %s2053_s24 = sphi %s2170_s24, %s2620_s24   ;;  %s2049_s23 = sphi %s2168_s23, %s2619_s23   ;;  %s2045_s22 = sphi %s2166_s22, %s2618_s22   ;;  %s2041_s21 = sphi %s2164_s21, %s2617_s21   ;;  %s2037_s20 = sphi %s2162_s20, %s2616_s20   ;;  %s2033_s19 = sphi %s2160_s19, %s2615_s19   ;;  %s2029_s18 = sphi %s2158_s18, %s2614_s18  }
  0x19   : > { %2569 = sst [smem:[#allocation22_spill]] %s2033_s19  ;;  %s1579_s27 = sadd.s32 4294967294, %s2057_s25  }
  0x1a   : > { %2570 = sst [smem:[#allocation23_spill]] %s2037_s20  ;;  %p64_p0 = scmp.ne.s32.totalorder %s2033_s19, %s2029_s18 }
  0x1b   : > { %2571 = sst [smem:[#allocation24_spill]] %s2045_s22  ;;  %p65_p1 = scmp.eq.s32.totalorder %s2199_s26, 0 }
  0x1c   : > { %2572 = sst [smem:[#allocation25_spill]] %s2049_s23  ;;  %p437_p2 = scmp.eq.s32.totalorder %s2199_s26, 3 }
  0x1d   : > { %2573 = sst [smem:[#allocation26_spill]] %s2053_s24  ;;  %p443_p3 = scmp.eq.s32.totalorder %s1579_s27, 3 }
  0x1e   : > { %p2208_p4 = por %p65_p1, %p64_p0  ;;  %p1580_p5 = scmp.ge.s32.totalorder %s2057_s25, 1 }
  0x1f   : > { %p2213_p6 = por %p443_p3, %p64_p0  ;;  %p450_p7 = scmp.lt.s32.totalorder %s2057_s25, 5 }
  0x20   : > { %s2577_s1 = sld [smem:[#allocation33_spill]]  ;;  %s2059_s18 = smov [#allocation11]  }
  0x21   : > { %s2575_s29 = scalar_select %p2213_p6, 1, 0 }
  0x22   : > { %p2221_p8 = pnand %p1580_p5, %p450_p7  ;;  %s464_s15 = sshll.u32 %s2059_s18, 4  ;;  %s465_s15 = int_to_ptr.vmem [resolvable:$true] %s464_s15 }
  0x23   : > { %2576 = sst [smem:[#allocation27_spill]] %s2575_s29  ;;  %s41_s16 = sadd.s32 1, %s2049_s23 }
  0x24   : > { %p1685_p9 = pneg %p2221_p8  ;;  %p42_p11 = scmp.ge.s32.totalorder %s41_s16, 2 }
  0x25   : > { %s51_s29 = sadd.s32 1, %s2037_s20  ;;  %p58_p12 = scmp.ne.s32.totalorder %s2037_s20, %s2033_s19 }
  0x26   : > { %s462_s17 = sshll.u32 %s2577_s1, 4  ;;  %p2229_p10 = pnand %p1685_p9, %p65_p1  ;;  %s463_s17 = int_to_ptr.hbm [resolvable:$true] %s462_s17 }
  0x27   : > { %s44_s1 = sadd.s32 1, %s2053_s24  ;;  %s2622_s16 = smov (%p42_p11, %s41_s16), 0 }
  0x28   : > { %1688 = dma.hbm_to_vmem [thread:$0]  (!%p2229_p10), %s463_s17, 128, %s465_s15, [#allocation12]  }
  0x29   : > { %2580 = sst [smem:[#allocation28_spill]] %s2622_s16  ;;  %s2624_s1 = smov (!%p42_p11, %s44_s1), %s2053_s24 }
  0x2a   : > { %p59_p13 = scmp.eq.s32.totalorder %s2057_s25, 0  ;;  %p2246_p0 = por %p437_p2, %p58_p12 }
  0x2b   : > { %p46_p3 = scmp.ge.s32.totalorder %s2624_s1, 2  ;;  %p1705_p5 = scmp.lt.s32.totalorder %s2057_s25, 4 }
  0x2c   : > { %s2581_s18 = scalar_select %p2246_p0, 1, 0 }
  0x2d   : > { %p2251_p7 = por %p59_p13, %p58_p12  ;;  %s490_s17 = sand.u32 1, %s2057_s25  }
  0x2e   : > { %2582 = sst [smem:[#allocation29_spill]] %s2581_s18  ;;  %s2626_s1 = smov (%p46_p3, %s2624_s1), 0 }
  0x2f   : > { %2584 = sst [smem:[#allocation30_spill]] %s2626_s1  ;;  %s492_s16 = sand.u32 1, %s2037_s20  }
  0x30   : > { %s48_s23 = ssub.s32 %s2053_s24, %s2626_s1  ;;  %s1584_s22 = sshll.u32 %s492_s16, 3 }
  0x31   : > { %p49_p9 = scmp.eq.s32.totalorder %s48_s23, 0  ;;  %s1585_s3 = sshll.u32 %s2053_s24, 3 }
  0x32   : > { %s494_s14 = scalar_lea.vmem [#allocation8], %s1584_s22  ;;  %s2586_s0 = sld [smem:[#allocation32_spill]] }
  0x33   : > { %s502_s18 = sshll.u32 %s494_s14, 4  ;;  %p2272_p2 = pnand %p1705_p5, %p2251_p7  ;;  %s503_s18 = int_to_ptr.vmem [resolvable:$true] %s502_s18 }
  0x34   : > { %s2263_s13 = scalar_select %p49_p9, %s2037_s20, %s51_s29  }
  0x35   : > { %s2588_s4 = sld [smem:[#allocation36_spill]]  ;;  %s491_s29 = scalar_lea.sflag [#allocation9], %s490_s17 }
  0x36   : > { %2585 = sst [smem:[#allocation31_spill]] %s2263_s13  ;;  %s512_s1 = scalar_lea.vmem [#allocation13], %s492_s16 }
  0x37   : > { %s2589_s2 = sld [smem:[#allocation34_spill]]  ;;  %s519_s13 = sshll.u32 %s512_s1, 4  ;;  %s520_s13 = int_to_ptr.vmem [resolvable:$true] %s519_s13 }
  0x38   : > { %s498_s10 = scalar_lea.hbm %s2586_s0, %s1585_s3  ;;  %s2060_s3 = smov [#allocation14]  }
  0x39   : > { %s500_s9 = sshll.u32 %s498_s10, 4  ;;  %s479_s11 = sshll.u32 %s2060_s3, 4  ;;  %s501_s9 = int_to_ptr.hbm [resolvable:$true] %s500_s9  ;;  %s480_s11 = int_to_ptr.vmem [resolvable:$true] %s479_s11 }
  0x3a   : > { %1695 = dma.hbm_to_vmem [thread:$0]  (!%p2272_p2), %s501_s9, 128, %s503_s18, %s491_s29  }
  0x3b   : > { %s477_s23 = sshll.u32 %s2588_s4, 4  ;;  %596 = sbr.rel (%p2221_p8) target bundleno = 2231 (0x8b7), region = 80  ;;  %s478_s23 = int_to_ptr.hbm [resolvable:$true] %s477_s23 }
  0x3c   : > { %1691 = dma.hbm_to_vmem [thread:$0]  (!%p2229_p10), %s478_s23, 16, %s480_s11, [#allocation12]  }
  0x3d   : > { %s515_s15 = scalar_lea.hbm %s2589_s2, %s2053_s24  ;;  %s598_s9 = sand.u32 (!%p2221_p8), 1, %s2199_s26  }
  0x3e   : > { %s517_s0 = sshll.u32 %s515_s15, 4  ;;  %s2293_s18 = sand.u32 (!%p2221_p8), 1, %s2033_s19   ;;  %s518_s0 = int_to_ptr.hbm [resolvable:$true] %s517_s0 }
  0x3f   : > { %1698 = dma.hbm_to_vmem [thread:$0]  (!%p2272_p2), %s518_s0, 16, %s520_s13, %s491_s29  }
  0x40   : > { %s1587_s17 = sshll.u32 %s2293_s18, 3  ;;  %s599_s22 = scalar_lea.sflag [#allocation9], %s598_s9 }
  0x41   : > { %s602_s30 = scalar_lea.vmem [#allocation8], %s1587_s17 }
  0x42   : > { %2008 = dma.done.wait (%p2208_p4), %s599_s22, 128  }
  0x43   : > { %2010 = vsyncadd (%p2208_p4), %s599_s22, 4294967168 }
  0x44   : > { %2012 = dma.done.wait (%p65_p1), [#allocation12], 128  }
  0x45   : > { %2014 = vsyncadd (%p65_p1), [#allocation12], 4294967168 }
  0x46   : > { %2016 = dma.done.wait (%p2208_p4), %s599_s22, 16  }
  0x47   : > { %2018 = vsyncadd (%p2208_p4), %s599_s22, 4294967280 }
  0x48   : > { %2020 = dma.done.wait (%p65_p1), [#allocation12], 16  }
  0x49   : > { %2022 = vsyncadd (%p65_p1), [#allocation12], 4294967280  ;;  %p711_p8 = scmp.lt.s32.totalorder %s2041_s21, 1  ;;  %s2590_s5 = sld [smem:[#allocation37_spill]] }
  0x4a   : > { %s2591_s6 = sld [smem:[#allocation38_spill]]  ;;  %s2363_s13 = scalar_lea.vmem [#allocation15], %s1587_s17 }
  0x4b   : > { %s2315_s1 = scalar_select %p711_p8, %s2041_s21, 1 }
  0x4c   : > { %s2593_s0 = sld [smem:[#allocation40_spill]]  ;;  %p1599_p1 = scmp.ne.s32.totalorder %s2041_s21, 0 }
  0x4d   : > { %s1657_s8 = sshll.u32 %s2315_s1, 4  ;;  %s2594_s27 = sld [smem:[#allocation41_spill]] }
  0x4e   : > { %s1660_s16 = sshll.u32 %s2315_s1, 5  ;;  %s2595_s24 = sld [smem:[#allocation42_spill]] }
  0x4f   : > { %s2325_s14 = scalar_lea.vmem %s2590_s5, %s1657_s8  ;;  %s2596_s20 = sld [smem:[#allocation43_spill]] }
  0x50   : > { %s2330_s3 = scalar_lea.vmem %s2591_s6, %s1657_s8  ;;  %s2597_s15 = sld [smem:[#allocation44_spill]] }
  0x51   : > { %s2598_s22 = sld [smem:[#allocation45_spill]]  ;;  %s2599_s4 = scalar_lea.vmem (!%p1599_p1), [#allocation13], %s2293_s18 }
  0x52   : > { %s2339_s2 = scalar_lea.vmem %s2593_s0, %s1657_s8 }
  0x53   : > { %s734_s26 = scalar_lea.vmem %s2594_s27, %s2315_s1  ;;  %753 = sbr.rel (%p1599_p1) target bundleno = 360 (0x168), region = 100 }
  0x54   : > { %s2349_s23 = scalar_lea.vmem %s2595_s24, %s1660_s16 }
  0x55   : > { %s742_s11 = scalar_lea.vmem %s2596_s20, %s2315_s1  ;;  %s2600_s20 = sld [smem:[#allocation35_spill]] (!%p1599_p1) }
  0x56   : > { %s745_s9 = scalar_lea.vmem %s2597_s15, %s2315_s1 }
  0x57   : > { %s748_s19 = scalar_lea.vmem %s2598_s22, %s2315_s1 }
  0x58   : > { %v754_v0 = vld [vmem:[%s602_s30] sm:$0xff]  ;;  %v755_v1 = vld [vmem:[#allocation11] sm:$0xff]  ;;  %vm759_vm0 = vcmask 261120   ;;  %v2061_v4 = vmov 32.0   ;;  %v2062_v17 = vmov 0.0   ;;  %vm801_vm3 = vcmask 57344  }
  0x59   : > { %v756_v2 = vadd.f32 %v755_v1, %v754_v0  ;;  %1794 = vrcp.f32 %v2061_v4  ;;  %v798_v16 = vld [vmem:[%s2599_s4] sm:$0x1]  ;;  %v1793_v30 = vld [vmem:[#allocation14] ss:$0 sm:$0xff] }
  0x5a   : > { %vm799_vm2 = vcmp.eq.f32.partialorder %v798_v16, 0.0 }
  0x5b   : > { %v760_v3 = vsel %vm759_vm0, %v756_v2, 0.0  ;;  %v800_v18 = vsel %vm799_vm2, -1e+09, %v2062_v17  ;;  %v1792_v28 = vld [vmem:[%s2600_s20] ss:$0 sm:$0xff] }
  0x5c   : > { %761 = vadd.xlane.f32.xlu0 %v760_v3  ;;  %802 = vst.msk [vmem:[#allocation3] sm:$0x1] %vm801_vm3, %v800_v18 }
  0x5f   : > { %v1795_v5 = vpop.eup %1794 }
  0x60   : > { %v764_v6 = vmul.f32 32.0, %v1795_v5  ;;  %vm768_vm1 = vweird.f32 %v1795_v5 }
  0x62   : > { %v765_v7 = vsub.f32 1.0, %v764_v6 }
  0x64   : > { %v766_v8 = vmul.f32 %v1795_v5, %v765_v7 }
  0x66   : > { %v767_v9 = vadd.f32 %v1795_v5, %v766_v8 }
  0x68   : > { %v769_v10 = vsel %vm768_vm1, %v1795_v5, %v767_v9 }
  0xcf   : > { %v762_v11 = vpop.xlane.xlu0 %761 }
  0xd0   : > { %v770_v12 = vmul.f32 %v769_v10, %v762_v11 }
  0xd2   : > { %v771_v13 = vsub.f32 %v756_v2, %v770_v12 }
  0xd4   : > { %v772_v14 = vmul.f32 %v771_v13, %v771_v13 }
  0xd6   : > { %v773_v15 = vsel %vm759_vm0, %v772_v14, 0.0 }
  0xd7   : > { %774 = vadd.xlane.f32.xlu0 %v773_v15 }
 0x14a   : > { %v775_v19 = vpop.xlane.xlu0 %774 }
 0x14b   : > { %v776_v20 = vmul.f32 %v775_v19, %v769_v10 }
 0x14d   : > { %v777_v21 = vadd.f32 1e-06, %v776_v20 }
 0x14f   : > { %1796 = vrsqrt.f32 %v777_v21  ;;  %vm784_vm5 = vweird.f32 %v777_v21 }
 0x155   : > { %v1797_v22 = vpop.eup %1796 }
 0x156   : > { %v779_v23 = vmul.f32 %v1797_v22, %v777_v21  ;;  %vm785_vm4 = vweird.f32 %v1797_v22 }
 0x157   : > { %vm786_vm6 = vmor %vm784_vm5, %vm785_vm4 }
 0x158   : > { %v780_v24 = vmul.f32 %v1797_v22, %v779_v23 }
 0x15a   : > { %v781_v25 = vmul.f32 0.5, %v780_v24 }
 0x15c   : > { %v782_v26 = vsub.f32 1.5, %v781_v25 }
 0x15e   : > { %v783_v27 = vmul.f32 %v1797_v22, %v782_v26 }
 0x160   : > { %v787_v29 = vsel %vm786_vm6, %v1797_v22, %v783_v27 }
 0x161   : > { %v788_v31 = vmul.f32 %v787_v29, %v771_v13 }
 0x163   : > { %v792_v32 = vmul.f32 %v1792_v28, %v788_v31 }
 0x165   : > { %v796_v33 = vadd.f32 %v1793_v30, %v792_v32 }
 0x167   : > { %797 = vst.msk [vmem:[#allocation2] sm:$0xff] %vm759_vm0, %v796_v33 }
 0x168 PF: > { %v1662_v34 = vld [vmem:[%s2325_s14 + $0x8] sm:$0xff]  ;;  %v1661_v35 = vld [vmem:[%s2325_s14] sm:$0xff]  ;;  %vm821_vm7 = vcmask 261120   ;;  %vm840_vm8 = vcmask 60416   ;;  %s2063_s24 = smov 72   ;;  %s2064_s17 = smov 88  }
 0x169   : > { %831 = vmatpush.bf16.msra.mxu0 %v1662_v34  ;;  %s2065_s30 = smov 120   ;;  %s2066_s27 = smov 80   ;;  %vm910_vm9 = vcmask 64512   ;;  %v1798_v62 = vld [vmem:[#allocation3] ss:$0 sm:$0xff]  ;;  %vm1042_vm10 = vcmask 1043456  }
 0x16a   : > { %s2067_s14 = smov 104   ;;  %s2068_s15 = smov 112   ;;  %vm1123_vm11 = vcmask 126016   ;;  %vm1130_vm12 = vcmask 191616   ;;  %vm1137_vm13 = vcmask 257216   ;;  %vm1288_vm3 = vcmask 523264  }
 0x16b   : > { %s2069_s28 = smov 96   ;;  %s2070_s16 = smov 48  }
 0x16c   : > { %s2071_s29 = smov 64   ;;  %s2072_s10 = smov 56  }
 0x16d   : > { %832 = vmatpush.bf16.msra.mxu0 %v1661_v35  ;;  %s2073_s12 = smov 40   ;;  %s2074_s0 = smov 8  }
 0x16e   : > { %v2376_v36 = vld [vmem:[#allocation2] sm:$0xff]  ;;  %s2075_s8 = smov 16   ;;  %s2076_s22 = smov 24  }
 0x16f   : > { %v804_v37 = vpack.c.bf16 %v2376_v36, %v2376_v36  ;;  %s2601_s4 = scalar_lea.vmem %s2534_s7, %s2315_s1  ;;  %s2602_s20 = sld [smem:[#allocation39_spill]] }
 0x170   : > { %p1652_p4 = scmp.ne.s32.totalorder %s2041_s21, 1 }
 0x171   : > { %1608 = vmatmul.msk.bf16.vlgmr.msra.gmra.mxu0 %vm821_vm7, %v804_v37 }
 0x1ee   : > { %v834_v38 = vpop.f32.mrf.mxu0 }
 0x1ef   : > { %v838_v39 = vmul.f32 0.35355338, %v834_v38  ;;  %v2381_v40 = vpack.c.bf16 %v834_v38, %v834_v38 }
 0x1f1   : > { %v839_v41 = vpack.c.bf16 %v838_v39, %v838_v39  ;;  %888 = vrot.lane.b32.xlu2 %v2381_v40, %s2063_s24  ;;  %858 = vrot.lane.b32.xlu0 %v2381_v40, %s2064_s17  ;;  %s2603_s24 = scalar_lea.vmem %s2602_s20, %s2315_s1 }
 0x1f3   : > { %841 = vst.msk [vmem:[#allocation4] sm:$0xf] %vm840_vm8, %v839_v41  ;;  %853 = vrot.lane.b32.xlu1 %v839_v41, %s2065_s30 }
 0x1f6   : > { %v836_v42 = vpop.f32.mrf.mxu0 }
 0x1f9   : > { %873 = vrot.lane.b32.xlu0 %v2381_v40, %s2066_s27  ;;  %883 = vrot.lane.b32.xlu2 %v839_v41, %s2067_s14 }
 0x1fa   : > { %v898_v61 = vld [vmem:[#allocation4] sm:$0xf] }
 0x1fb   : > { %868 = vrot.lane.b32.xlu1 %v839_v41, %s2068_s15 }
 0x201   : > { %844 = vrot.lane.b32.xlu0 %v2381_v40, %s2069_s28 }
 0x24b   : > { %v889_v43 = vpop.permute.xlu2 %888 }
 0x24c   : > { %892 = vst.msk [vmem:[#allocation5 + $0xc] sm:$0xf] %vm840_vm8, %v889_v43 }
 0x253   : > { %v884_v44 = vpop.permute.xlu2 %883  ;;  %v905_v45 = vld [vmem:[#allocation5 + $0xc] sm:$0xf] }
 0x254   : > { %887 = vst.msk [vmem:[#allocation4 + $0xc] sm:$0xf] %vm840_vm8, %v884_v44  ;;  %v972_v46 = vsel %vm910_vm9, %v905_v45, 0 }
 0x255   : > { %981 = vmatpush.bf16.xpose.msrb.mxu0 %v972_v46 }
 0x25b   : > { %v901_v47 = vld [vmem:[#allocation4 + $0xc] sm:$0xf] }
 0x25c   : > { %1612 = vmatmul.msk.bf16.vlgmr.msrb.gmra.mxu0 %vm910_vm9, %v901_v47 }
 0x263   : > { %v859_v48 = vpop.permute.xlu0 %858 }
 0x264   : > { %862 = vst.msk [vmem:[#allocation5 + $0x4] sm:$0xf] %vm840_vm8, %v859_v48 }
 0x265   : > { %v854_v49 = vpop.permute.xlu1 %853 }
 0x266   : > { %857 = vst.msk [vmem:[#allocation4 + $0x4] sm:$0xf] %vm840_vm8, %v854_v49 }
 0x26b   : > { %v874_v50 = vpop.permute.xlu0 %873  ;;  %v903_v51 = vld [vmem:[#allocation5 + $0x4] sm:$0xf] }
 0x26c   : > { %877 = vst.msk [vmem:[#allocation5 + $0x8] sm:$0xf] %vm840_vm8, %v874_v50  ;;  %v934_v52 = vsel %vm910_vm9, %v903_v51, 0 }
 0x26d   : > { %943 = vmatpush.bf16.xpose.msra.mxu2 %v934_v52  ;;  %v869_v53 = vpop.permute.xlu1 %868  ;;  %v899_v55 = vld [vmem:[#allocation4 + $0x4] sm:$0xf] }
 0x26e   : > { %872 = vst.msk [vmem:[#allocation4 + $0x8] sm:$0xf] %vm840_vm8, %v869_v53 }
 0x273   : > { %v845_v54 = vpop.permute.xlu0 %844  ;;  %v904_v56 = vld [vmem:[#allocation5 + $0x8] sm:$0xf] }
 0x274   : > { %847 = vst.msk [vmem:[#allocation5] sm:$0xf] %vm840_vm8, %v845_v54  ;;  %1610 = vmatmul.msk.bf16.vlgmr.msra.gmra.mxu2 %vm910_vm9, %v899_v55  ;;  %v953_v57 = vsel %vm910_vm9, %v904_v56, 0 }
 0x275   : > { %962 = vmatpush.bf16.xpose.msra.mxu3 %v953_v57  ;;  %v900_v58 = vld [vmem:[#allocation4 + $0x8] sm:$0xf] }
 0x27b   : > { %v902_v59 = vld [vmem:[#allocation5] sm:$0xf] }
 0x27c   : > { %1611 = vmatmul.msk.bf16.vlgmr.msra.gmra.mxu3 %vm910_vm9, %v900_v58  ;;  %v915_v60 = vsel %vm910_vm9, %v902_v59, 0 }
 0x27d   : > { %924 = vmatpush.bf16.xpose.msra.mxu1 %v915_v60 }
 0x284   : > { %1609 = vmatmul.msk.bf16.vlgmr.msra.gmra.mxu1 %vm910_vm9, %v898_v61 }
 0x2d9   : > { %v983_v63 = vpop.f32.mrf.mxu0 }
 0x2da   : > { %v984_v0 = vadd.f32 %v1798_v62, %v983_v63 }
 0x2dc   : > { %v996_v1 = vsel %vm910_vm9, %v984_v0, -inf }
 0x2dd   : > { %997 = vmax.xlane.f32.xlu0 %v996_v1 }
 0x2e1   : > { %v985_v2 = vpop.f32.mrf.mxu0 }
 0x2f1   : > { %878 = vrot.lane.b32.xlu0 %v2381_v40, %s2070_s16 }
 0x2f7   : > { %v945_v3 = vpop.f32.mrf.mxu2 }
 0x2f8   : > { %v946_v4 = vadd.f32 %v1798_v62, %v945_v3 }
 0x2f9   : > { %848 = vrot.lane.b32.xlu0 %v2381_v40, %s2071_s29 }
 0x2fa   : > { %v990_v5 = vsel %vm910_vm9, %v946_v4, -inf }
 0x2fb   : > { %991 = vmax.xlane.f32.xlu1 %v990_v5 }
 0x2ff   : > { %v947_v6 = vpop.f32.mrf.mxu2  ;;  %v964_v7 = vpop.f32.mrf.mxu3 }
 0x300   : > { %v965_v8 = vadd.f32 %v1798_v62, %v964_v7 }
 0x301   : > { %v926_v9 = vpop.f32.mrf.mxu1 }
 0x302   : > { %v993_v10 = vsel %vm910_vm9, %v965_v8, -inf  ;;  %v927_v11 = vadd.f32 %v1798_v62, %v926_v9 }
 0x303   : > { %994 = vmax.xlane.f32.xlu2 %v993_v10 }
 0x304   : > { %v987_v14 = vsel %vm910_vm9, %v927_v11, -inf }
 0x307   : > { %v966_v12 = vpop.f32.mrf.mxu3 }
 0x308   : > { %v1664_v12 = vld [vmem:[%s2330_s3 + $0x8] sm:$0xff] }
 0x309   : > { %v928_v13 = vpop.f32.mrf.mxu1 }
 0x30a   : > { %v1663_v13 = vld [vmem:[%s2330_s3] sm:$0xff] }
 0x30b   : > { %988 = vmax.xlane.f32.xlu2 %v987_v14 }
 0x314   : > { %863 = vrot.lane.b32.xlu1 %v2381_v40, %s2072_s10 }
 0x350   : > { %v998_v15 = vpop.xlane.xlu0 %997 }
 0x351   : > { %v1002_v16 = vsub.f32 %v984_v0, %v998_v15 }
 0x353   : > { %v1009_v17 = vmul.f32 1.442695, %v1002_v16 }
 0x355   : > { %1805 = vpow2.f32 %v1009_v17 }
 0x35b   : > { %v1806_v18 = vpop.eup %1805 }
 0x35c   : > { %v1020_v19 = vsel %vm910_vm9, %v1806_v18, 0.0 }
 0x35d   : > { %1021 = vadd.xlane.f32.xlu1 %v1020_v19 }
 0x363   : > { %v879_v20 = vpop.permute.xlu0 %878 }
 0x364   : > { %882 = vst.msk [vmem:[#allocation6 + $0x8] sm:$0xf] %vm840_vm8, %v879_v20 }
 0x36b   : > { %v849_v21 = vpop.permute.xlu0 %848  ;;  %v1037_v22 = vld [vmem:[#allocation6 + $0x8] sm:$0xf] }
 0x36c   : > { %851 = vst.msk [vmem:[#allocation6] sm:$0xf] %vm840_vm8, %v849_v21  ;;  %v1082_v23 = vsel %vm1042_vm10, %v1037_v22, 0  ;;  %v2077_v22 = vmov 32.0  }
 0x36d   : > { %1091 = vmatpush.bf16.msrb.mxu3 %v1082_v23 }
 0x36e   : > { %v992_v24 = vpop.xlane.xlu1 %991 }
 0x36f   : > { %v1000_v25 = vsub.f32 %v946_v4, %v992_v24 }
 0x371   : > { %v1005_v26 = vmul.f32 1.442695, %v1000_v25 }
 0x373   : > { %1807 = vpow2.f32 %v1005_v26  ;;  %v1035_v27 = vld [vmem:[#allocation6] sm:$0xf] }
 0x374   : > { %v1044_v28 = vsel %vm1042_vm10, %v1035_v27, 0 }
 0x375   : > { %1053 = vmatpush.bf16.msrb.mxu1 %v1044_v28 }
 0x376   : > { %v995_v29 = vpop.xlane.xlu2 %994 }
 0x377   : > { %v1001_v30 = vsub.f32 %v965_v8, %v995_v29 }
 0x379   : > { %v1808_v31 = vpop.eup %1807  ;;  %v1007_v32 = vmul.f32 1.442695, %v1001_v30  ;;  %1165 = vmatpush.bf16.msra.mxu1 %v1664_v12 }
 0x37a   : > { %v1014_v33 = vsel %vm910_vm9, %v1808_v31, 0.0 }
 0x37b   : > { %1809 = vpow2.f32 %v1007_v32  ;;  %1015 = vadd.xlane.f32.xlu2 %v1014_v33  ;;  %v1666_v33 = vld [vmem:[%s2339_s2 + $0x8] sm:$0xff] }
 0x37d   : > { %1166 = vmatpush.bf16.msra.mxu1 %v1663_v13 }
 0x37e   : > { %v989_v34 = vpop.xlane.xlu2 %988 }
 0x37f   : > { %v999_v35 = vsub.f32 %v927_v11, %v989_v34  ;;  %v1665_v34 = vld [vmem:[%s2339_s2] sm:$0xff] }
 0x381   : > { %v1810_v37 = vpop.eup %1809  ;;  %v1003_v38 = vmul.f32 1.442695, %v999_v35  ;;  %v1670_v35 = vld [vmem:[%s2349_s23 + $0x18] sm:$0xff] }
 0x382   : > { %v1017_v39 = vsel %vm910_vm9, %v1810_v37, 0.0  ;;  %1296 = vmatpush.bf16.msra.mxu3 %v1670_v35 }
 0x383   : > { %1811 = vpow2.f32 %v1003_v38  ;;  %1018 = vadd.xlane.f32.xlu2 %v1017_v39  ;;  %v1669_v39 = vld [vmem:[%s2349_s23 + $0x10] sm:$0xff] }
 0x386   : > { %v864_v41 = vpop.permute.xlu1 %863  ;;  %1297 = vmatpush.bf16.msra.mxu3 %v1669_v39 }
 0x387   : > { %867 = vst.msk [vmem:[#allocation6 + $0x4] sm:$0xf] %vm840_vm8, %v864_v41 }
 0x389   : > { %v1812_v42 = vpop.eup %1811 }
 0x38a   : > { %v1011_v43 = vsel %vm910_vm9, %v1812_v42, 0.0 }
 0x38b   : > { %1012 = vadd.xlane.f32.xlu0 %v1011_v43 }
 0x38e   : > { %v1036_v44 = vld [vmem:[#allocation6 + $0x4] sm:$0xf] }
 0x38f   : > { %v1063_v45 = vsel %vm1042_vm10, %v1036_v44, 0 }
 0x390   : > { %1072 = vmatpush.bf16.msrb.mxu2 %v1063_v45 }
 0x394   : > { %1241 = vmatpush.bf16.msra.mxu2 %v1666_v33 }
 0x398   : > { %1242 = vmatpush.bf16.msra.mxu2 %v1665_v34 }
 0x39b   : > { %893 = vrot.lane.b32.xlu2 %v2381_v40, %s2073_s12 }
 0x3d0   : > { %v1022_v51 = vpop.xlane.xlu1 %1021 }
 0x3ee   : > { %v1016_v46 = vpop.xlane.xlu2 %1015 }
 0x3ef   : > { %1813 = vrcp.f32 %v1016_v46 }
 0x3f5   : > { %v1814_v47 = vpop.eup %1813 }
 0x3f6   : > { %v1028_v48 = vmul.f32 %v1814_v47, %v1808_v31  ;;  %v1019_v49 = vpop.xlane.xlu2 %1018 }
 0x3f7   : > { %1815 = vrcp.f32 %v1019_v49 }
 0x3f8   : > { %v1032_v50 = vpack.c.bf16 %v1028_v48, %v1028_v48  ;;  %1817 = vrcp.f32 %v1022_v51  ;;  %v1799_v48 = vld [vmem:[%s2601_s4] ss:$0 sm:$0xff] }
 0x3fa   : > { %1614 = vmatmul.msk.bf16.vlgmr.msrb.gmra.mxu2 %vm910_vm9, %v1032_v50  ;;  %v1800_v50 = vld [vmem:[%s2603_s24] ss:$0 sm:$0xff] }
 0x3fd   : > { %v1816_v52 = vpop.eup %1815 }
 0x3fe   : > { %v1029_v53 = vmul.f32 %v1816_v52, %v1810_v37  ;;  %v894_v54 = vpop.permute.xlu2 %893  ;;  %v1013_v55 = vpop.xlane.xlu0 %1012 }
 0x3ff   : > { %897 = vst.msk [vmem:[#allocation6 + $0xc] sm:$0xf] %vm840_vm8, %v894_v54  ;;  %1819 = vrcp.f32 %v1013_v55  ;;  %v1818_v40 = vpop.eup %1817  ;;  %v1668_v55 = vld [vmem:[%s2349_s23 + $0x8] sm:$0xff] }
 0x400   : > { %v1033_v56 = vpack.c.bf16 %v1029_v53, %v1029_v53  ;;  %v1030_v58 = vmul.f32 %v1818_v40, %v1806_v18  ;;  %1821 = vrcp.f32 %v2077_v22  ;;  %1298 = vmatpush.bf16.msra.mxu3 %v1668_v55  ;;  %v1801_v40 = vld [vmem:[%s734_s26] ss:$0 sm:$0xff] }
 0x402   : > { %1615 = vmatmul.msk.bf16.vlgmr.msrb.gmra.mxu3 %vm910_vm9, %v1033_v56  ;;  %v1034_v63 = vpack.c.bf16 %v1030_v58, %v1030_v58  ;;  %v1667_v56 = vld [vmem:[%s2349_s23] sm:$0xff] }
 0x404   : > { %1299 = vmatpush.bf16.msra.mxu3 %v1667_v56 }
 0x405   : > { %v1820_v57 = vpop.eup %1819 }
 0x406   : > { %v1027_v59 = vmul.f32 %v1820_v57, %v1812_v42  ;;  %v1038_v60 = vld [vmem:[#allocation6 + $0xc] sm:$0xf]  ;;  %v1822_v23 = vpop.eup %1821 }
 0x407   : > { %v1101_v61 = vsel %vm1042_vm10, %v1038_v60, 0  ;;  %v1178_v24 = vmul.f32 32.0, %v1822_v23  ;;  %vm1182_vm14 = vweird.f32 %v1822_v23 }
 0x408   : > { %1110 = vmatpush.bf16.msra.mxu0 %v1101_v61  ;;  %v1031_v62 = vpack.c.bf16 %v1027_v59, %v1027_v59 }
 0x409   : > { %v1179_v25 = vsub.f32 1.0, %v1178_v24 }
 0x40a   : > { %1613 = vmatmul.msk.bf16.vlgmr.msrb.gmra.mxu1 %vm910_vm9, %v1031_v62 }
 0x40b   : > { %1616 = vmatmul.msk.bf16.vlgmr.msra.gmra.mxu0 %vm910_vm9, %v1034_v63  ;;  %v1180_v26 = vmul.f32 %v1822_v23, %v1179_v25  ;;  %v1802_v63 = vld [vmem:[%s742_s11] ss:$0 sm:$0xff] }
 0x40d   : > { %v1181_v27 = vadd.f32 %v1822_v23, %v1180_v26 }
 0x40f   : > { %v2433_v28 = vsel %vm1182_vm14, %v1822_v23, %v1181_v27 }
 0x47d   : > { %v1074_v0 = vpop.f32.mrf.mxu2 }
 0x47e   : > { %v1118_v1 = vpack.c.bf16 %v1074_v0, %v1074_v0 }
 0x480   : > { %1120 = vrot.lane.b32.xlu2 %v1118_v1, %s2074_s0 }
 0x485   : > { %v1076_v2 = vpop.f32.mrf.mxu2  ;;  %v1093_v3 = vpop.f32.mrf.mxu3 }
 0x486   : > { %v1125_v4 = vpack.c.bf16 %v1093_v3, %v1093_v3 }
 0x487   : > { %v1055_v5 = vpop.f32.mrf.mxu1 }
 0x488   : > { %v1116_v6 = vpack.c.bf16 %v1055_v5, %v1055_v5  ;;  %v1112_v7 = vpop.f32.mrf.mxu0  ;;  %1127 = vrot.lane.b32.xlu2 %v1125_v4, %s2075_s8 }
 0x489   : > { %v1132_v9 = vpack.c.bf16 %v1112_v7, %v1112_v7 }
 0x48a   : > { %1117 = vst.msk [vmem:[#allocation7] sm:$0xf] %vm840_vm8, %v1116_v6 }
 0x48d   : > { %v1095_v8 = vpop.f32.mrf.mxu3 }
 0x48f   : > { %v1057_v10 = vpop.f32.mrf.mxu1 }
 0x490   : > { %v1114_v11 = vpop.f32.mrf.mxu0  ;;  %1134 = vrot.lane.b32.xlu2 %v1132_v9, %s2076_s22 }
 0x4da   : > { %v1121_v14 = vpop.permute.xlu2 %1120 }
 0x4db   : > { %1124 = vst.msk [vmem:[#allocation7] sm:$0xf] %vm1123_vm11, %v1121_v14 }
 0x4e2   : > { %v1128_v15 = vpop.permute.xlu2 %1127 }
 0x4e3   : > { %1131 = vst.msk [vmem:[#allocation7] sm:$0xf] %vm1130_vm12, %v1128_v15 }
 0x4ea   : > { %v1135_v16 = vpop.permute.xlu2 %1134 }
 0x4eb   : > { %1138 = vst.msk [vmem:[#allocation7] sm:$0xf] %vm1137_vm13, %v1135_v16 }
 0x4f2   : > { %v1139_v17 = vld [vmem:[#allocation7] sm:$0xf] }
 0x4f3   : > { %1625 = vmatmul.msk.bf16.vlgmr.msra.gmra.mxu1 %vm821_vm7, %v1139_v17 }
 0x570   : > { %v1168_v18 = vpop.f32.mrf.mxu1 }
 0x571   : > { %v1169_v19 = vadd.f32 %v1168_v18, %v2376_v36 }
 0x573   : > { %v1174_v20 = vsel %vm821_vm7, %v1169_v19, 0.0 }
 0x574   : > { %1175 = vadd.xlane.f32.xlu1 %v1174_v20 }
 0x578   : > { %v1170_v21 = vpop.f32.mrf.mxu1 }
 0x579   : > { %v1804_v21 = vld [vmem:[%s748_s19] ss:$0 sm:$0xff] }
 0x5e7   : > { %v1176_v29 = vpop.xlane.xlu1 %1175 }
 0x5e8   : > { %v1184_v36 = vmul.f32 %v2433_v28, %v1176_v29 }
 0x5ea   : > { %v1185_v30 = vsub.f32 %v1169_v19, %v1184_v36  ;;  %v1803_v19 = vld [vmem:[%s745_s9] ss:$0 sm:$0xff] }
 0x5ec   : > { %v1186_v31 = vmul.f32 %v1185_v30, %v1185_v30 }
 0x5ee   : > { %v1187_v32 = vsel %vm821_vm7, %v1186_v31, 0.0 }
 0x5ef   : > { %1188 = vadd.xlane.f32.xlu2 %v1187_v32 }
 0x662   : > { %v1189_v37 = vpop.xlane.xlu2 %1188 }
 0x663   : > { %v1190_v38 = vmul.f32 %v1189_v37, %v2433_v28 }
 0x665   : > { %v1191_v41 = vadd.f32 1e-06, %v1190_v38 }
 0x667   : > { %1823 = vrsqrt.f32 %v1191_v41  ;;  %vm1198_vm0 = vweird.f32 %v1191_v41 }
 0x66d   : > { %v1824_v42 = vpop.eup %1823 }
 0x66e   : > { %v1193_v43 = vmul.f32 %v1824_v42, %v1191_v41  ;;  %vm1199_vm15 = vweird.f32 %v1824_v42 }
 0x66f   : > { %vm1200_vm1 = vmor %vm1198_vm0, %vm1199_vm15 }
 0x670   : > { %v1194_v44 = vmul.f32 %v1824_v42, %v1193_v43 }
 0x672   : > { %v1195_v45 = vmul.f32 0.5, %v1194_v44 }
 0x674   : > { %v1196_v46 = vsub.f32 1.5, %v1195_v45 }
 0x676   : > { %v1197_v47 = vmul.f32 %v1824_v42, %v1196_v46 }
 0x678   : > { %v1201_v49 = vsel %vm1200_vm1, %v1824_v42, %v1197_v47 }
 0x679   : > { %v1202_v51 = vmul.f32 %v1201_v49, %v1185_v30 }
 0x67b   : > { %v1206_v52 = vmul.f32 %v1799_v48, %v1202_v51 }
 0x67d   : > { %v1210_v53 = vadd.f32 %v1800_v50, %v1206_v52 }
 0x67f   : > { %v1211_v54 = vpack.c.bf16 %v1210_v53, %v1210_v53 }
 0x681   : > { %1634 = vmatmul.msk.bf16.vlgmr.msra.gmra.mxu2 %vm821_vm7, %v1211_v54 }
 0x704   : > { %v1244_v57 = vpop.f32.mrf.mxu2 }
 0x705   : > { %v1245_v58 = vadd.f32 %v1801_v40, %v1244_v57 }
 0x707   : > { %vm1248_vm2 = vcmp.ge.f32.partialorder %v1245_v58, 0.0  ;;  %v1249_v59 = vmul.f32 0.01, %v1245_v58 }
 0x709   : > { %v1250_v60 = vsel %vm1248_vm2, %v1245_v58, %v1249_v59 }
 0x70a   : > { %v1251_v61 = vpack.c.bf16 %v1250_v60, %v1250_v60 }
 0x70c   : > { %v1246_v62 = vpop.f32.mrf.mxu2  ;;  %1651 = vmatmul.msk.bf16.vlgmr.msra.gmra.mxu3 %vm1288_vm3, %v1251_v61 }
 0x78f   : > { %v1301_v0 = vpop.f32.mrf.mxu3 }
 0x790   : > { %v1302_v1 = vadd.f32 %v1802_v63, %v1301_v0 }
 0x792   : > { %v1305_v2 = vadd.f32 %v1302_v1, %v1210_v53 }
 0x794   : > { %v1308_v3 = vsel %vm821_vm7, %v1305_v2, 0.0 }
 0x795   : > { %1309 = vadd.xlane.f32.xlu1 %v1308_v3 }
 0x797   : > { %v1303_v4 = vpop.f32.mrf.mxu3 }
 0x808   : > { %v1310_v5 = vpop.xlane.xlu1 %1309 }
 0x809   : > { %v1311_v6 = vmul.f32 %v1310_v5, %v2433_v28 }
 0x80b   : > { %v1312_v7 = vsub.f32 %v1305_v2, %v1311_v6 }
 0x80d   : > { %v1313_v8 = vmul.f32 %v1312_v7, %v1312_v7 }
 0x80f   : > { %v1314_v9 = vsel %vm821_vm7, %v1313_v8, 0.0 }
 0x810   : > { %1315 = vadd.xlane.f32.xlu0 %v1314_v9 }
 0x883   : > { %v1316_v10 = vpop.xlane.xlu0 %1315 }
 0x884   : > { %v1317_v11 = vmul.f32 %v1316_v10, %v2433_v28 }
 0x886   : > { %v1318_v12 = vadd.f32 1e-06, %v1317_v11 }
 0x888   : > { %1825 = vrsqrt.f32 %v1318_v12  ;;  %vm1325_vm5 = vweird.f32 %v1318_v12 }
 0x88e   : > { %v1826_v13 = vpop.eup %1825 }
 0x88f   : > { %v1320_v14 = vmul.f32 %v1826_v13, %v1318_v12  ;;  %vm1326_vm4 = vweird.f32 %v1826_v13 }
 0x890   : > { %vm1327_vm6 = vmor %vm1325_vm5, %vm1326_vm4 }
 0x891   : > { %v1321_v15 = vmul.f32 %v1826_v13, %v1320_v14 }
 0x893   : > { %v1322_v16 = vmul.f32 0.5, %v1321_v15 }
 0x895   : > { %v1323_v17 = vsub.f32 1.5, %v1322_v16 }
 0x897   : > { %v1324_v18 = vmul.f32 %v1826_v13, %v1323_v17 }
 0x899   : > { %v1328_v20 = vsel %vm1327_vm6, %v1826_v13, %v1324_v18 }
 0x89a   : > { %v1329_v22 = vmul.f32 %v1328_v20, %v1312_v7 }
 0x89c   : > { %v1333_v23 = vmul.f32 %v1803_v19, %v1329_v22  ;;  %1342 = sbr.rel (%p1652_p4) target bundleno = 2210 (0x8a2), region = 104 }
 0x89e   : > { %v1337_v24 = vadd.f32 %v1804_v21, %v1333_v23 }
 0x8a0   : > { %1338 = vst.msk [vmem:[#allocation2] sm:$0xff] %vm821_vm7, %v1337_v24 }
 0x8a1   : > { %1343 = vst.msk [vmem:[%s2363_s13] sm:$0xff] %vm821_vm7, %v1337_v24 }
 0x8a2 PF: > { %s2608_s9 = sld [smem:[#allocation24_spill]]  ;;  %s1357_s3 = sshll.u32 %s2363_s13, 4  ;;  %s1358_s3 = int_to_ptr.vmem [resolvable:$true] %s1357_s3 }
 0x8a3   : > { %s2610_s19 = sld [smem:[#allocation46_spill]]  ;;  %s1345_s5 = scalar_lea.sflag [#allocation10], %s2293_s18 }
 0x8a8   : > { %s1654_s0 = sshll.u32 %s2608_s9, 3 }
 0x8a9   : > { %s2611_s2 = smov %s2610_s19  ;;  %s1355_s22 = scalar_lea.hbm %s2610_s19, %s1654_s0 }
 0x8aa   : > { %s1359_s4 = sshll.u32 %s1355_s22, 4  ;;  %s1967_s17 = scalar_lea.hbm %s2611_s2, 16  ;;  %s1360_s4 = int_to_ptr.hbm [resolvable:$true] %s1359_s4 }
 0x8ab   : > { %s1961_s21 = sshra.s32 %s1360_s4, 4  ;;  %s1962_s21 = int_to_ptr.hbm [resolvable:$true] %s1961_s21 }
 0x8ac   : > { %s1963_s6 = scalar_lea.hbm %s1962_s21, 8  ;;  %p1968_p13 = scmp.lt.s32.totalorder %s1962_s21, %s2611_s2 }
 0x8ad   : > { %p1964_p10 = scmp.ne.s32.totalorder %s1962_s21, %s1963_s6  ;;  %p1969_p3 = scmp.lt.s32.totalorder %s1967_s17, %s1963_s6 }
 0x8af   : > { %p1965_p11 = pnand %p1964_p10, %p2246_p0  ;;  %p1970_p5 = por %p1969_p3, %p1968_p13 }
 0x8b1   : > { %p1966_p12 = pneg %p1965_p11 }
 0x8b3   : > { %p1971_p7 = pnand %p1970_p5, %p1966_p12 }
 0x8b5   : > { %1974 = shalt.err (!%p1971_p7)
}
 0x8b6   : > { %1683 = dma.vmem_to_hbm [thread:$0]  (%p2246_p0), %s1358_s3, 128, %s1360_s4, %s1345_s5  }
 0x8b7 PF: > { %s2612_s18 = sld [smem:[#allocation21_spill]]  ;;  %p1708_p9 = scmp.ge.s32.totalorder %s2057_s25, 2 }
 0x8b9   : > { %p1700_p2 = pnand %p1708_p9, %p2213_p6 }
 0x8bb   : > { %p1701_p8 = pneg %p1700_p2 }
 0x8bd   : > { %s1371_s14 = sand.u32 1, %s2612_s18  }
 0x8be   : > { %s1372_s15 = scalar_lea.sflag [#allocation10], %s1371_s14 }
 0x8bf   : > { %2024 = dma.done.wait (%p1701_p8), %s1372_s15, 128  }
 0x8c0   : > { %2026 = vsyncadd (%p1701_p8), %s1372_s15, 4294967168  ;;  %s32_s25 = sadd.s32 1, %s2057_s25   ;;  %s2614_s18 = sld [smem:[#allocation22_spill]] }
 0x8c1   : > { %p29_p1 = scmp.ge.s32.totalorder %s32_s25, 6   ;;  %s2615_s19 = sld [smem:[#allocation23_spill]] }
 0x8c2   : > { %s2616_s20 = sld [smem:[#allocation31_spill]] }
 0x8c3   : > { %s2617_s21 = sld [smem:[#allocation25_spill]]  ;;  %31 = sbr.rel (!%p29_p1) target bundleno = 24 (0x18), region = 191 }
 0x8c4   : > { %s2618_s22 = sld [smem:[#allocation26_spill]] }
 0x8c5   : > { %s2619_s23 = sld [smem:[#allocation28_spill]] }
 0x8c6   : > { %s2620_s24 = sld [smem:[#allocation30_spill]] }
 0x8c8   :  { %1378 = vsyncpa [#allocation9], 1 }
 0x8c9   :  { %1380 = vsyncpa [#allocation9 + $0x1], 1 }
 0x8ca   :  { %1381 = vsyncpa [#allocation12], 1 }
 0x8cb   :  { %1382 = vsyncpa [#allocation10], 1 }
 0x8cc   :  { %1384 = vsyncpa [#allocation10 + $0x1], 1 }

</bundles_post_ra>
